<compile_context>
chip_gen: v6e
topology: v6e:2x2x1
jax: 0.10.0
libtpu: 0.0.40
codegen_flags: <defaults>
</compile_context>

<pallas_src>
import jax
import jax.numpy as jnp
from jax.experimental import pallas as pl
from jax.experimental.pallas import tpu as pltpu

_LANES = 128     # lane width (last dim)
_SUBLANES = 8    # sublane granularity (second-to-last dim)


def _residual_dwconv_kernel(x_ref, w_ref, b_ref, o_ref):
    # x_ref : (H, W, C)  VMEM  one (batch, channel-tile) slab, C on lanes
    # w_ref : (9, C)     VMEM  3x3 taps, row k = (kh, kw) = (k // 3, k % 3);
    #                          row 4 (center) already holds 1 + w_center
    # b_ref : (1, C)     VMEM  per-channel bias
    # o_ref : (H, W, C)  VMEM  output slab
    H, W, C = x_ref.shape
    f32 = jnp.float32

    # Hoisted loop invariants (JAX does not CSE broadcast_in_dim in loops):
    # taps / bias broadcast to (W, C) once, plus the W-edge masks that zero
    # the wrapped column of the rolls.
    w = [jnp.broadcast_to(w_ref[k, :], (W, C)).astype(f32) for k in range(9)]
    bias = jnp.broadcast_to(b_ref[0, :], (W, C)).astype(f32)
    col = jax.lax.broadcasted_iota(jnp.int32, (W, C), 0)
    mask_l = (col > 0).astype(f32)        # column w may take x[.., w-1]
    mask_r = (col < W - 1).astype(f32)    # column w may take x[.., w+1]

    def row_body(h, carry):
        hm = jnp.maximum(h - 1, 0)
        hp = jnp.minimum(h + 1, H - 1)
        valid_top = jnp.where(h > 0, 1.0, 0.0).astype(f32)      # zero pad top
        valid_bot = jnp.where(h < H - 1, 1.0, 0.0).astype(f32)  # zero pad bot

        r_top = x_ref[hm].astype(f32) * valid_top     # x[h-1, :, :]
        r_mid = x_ref[h].astype(f32)                  # x[h,   :, :]
        r_bot = x_ref[hp].astype(f32) * valid_bot     # x[h+1, :, :]

        # Vertical (kh) accumulation per horizontal tap column kw.
        a0 = w[0] * r_top + w[3] * r_mid + w[6] * r_bot   # kw = 0
        a1 = w[1] * r_top + w[4] * r_mid + w[7] * r_bot   # kw = 1 (+ residual)
        a2 = w[2] * r_top + w[5] * r_mid + w[8] * r_bot   # kw = 2

        # out[w] = a0[w-1] + a1[w] + a2[w+1] + bias.
        # roll(+1) -> takes [w-1]; roll(W-1) == roll(-1) -> takes [w+1].
        out = (a1 + bias
               + mask_l * pltpu.roll(a0, 1, axis=0)
               + mask_r * pltpu.roll(a2, W - 1, axis=0))
        o_ref[h] = out.astype(o_ref.dtype)
        return carry

    jax.lax.fori_loop(0, H, row_body, 0, unroll=True if H <= 32 else 8)


def _round_up(n, m):
    return ((n + m - 1) // m) * m


def residual_dwconv_nhwc(x, weight, bias):
    """x: (B, H, W, C) f32/bf16 NHWC, weight: (C, 1, 3, 3) OIHW, bias: (C,).

    Returns  x + depthwise_conv3x3(x) + bias  with the same shape/dtype as x.
    """
    B, H, W0, C0 = x.shape

    # (9, C) taps in f32, residual identity folded into the center tap (f32
    # on the host avoids double rounding for low-precision weights).
    w9c = jnp.transpose(weight.astype(jnp.float32).reshape(C0, 9), (1, 0))
    w9c = w9c.at[4, :].add(1.0)
    b1c = bias.astype(jnp.float32).reshape(1, C0)

    # Lane-dense padding: C -> multiple of 128 (lanes), W -> multiple of 8
    # (sublanes) so every tile is an unmasked (8, 128) tile.  Padded channels
    # have zero taps/bias (center fold happened before padding) -> exact zeros.
    C = _round_up(C0, _LANES)
    W = _round_up(W0, _SUBLANES)
    if C != C0:
        w9c = jnp.pad(w9c, ((0, 0), (0, C - C0)))
        b1c = jnp.pad(b1c, ((0, 0), (0, C - C0)))
    x_in = x
    if C != C0 or W != W0:
        x_in = jnp.pad(x, ((0, 0), (0, 0), (0, W - W0), (0, C - C0)))

    ct = _LANES
    n_ct = C // ct

    out = pl.pallas_call(
        _residual_dwconv_kernel,
        out_shape=jax.ShapeDtypeStruct((B, H, W, C), x.dtype),
        grid_spec=pltpu.PrefetchScalarGridSpec(
            num_scalar_prefetch=0,
            grid=(B, n_ct),
            in_specs=[
                pl.BlockSpec((None, H, W, ct), lambda b, c: (b, 0, 0, c)),
                pl.BlockSpec((9, ct), lambda b, c: (0, c)),
                pl.BlockSpec((1, ct), lambda b, c: (0, c)),
            ],
            out_specs=pl.BlockSpec((None, H, W, ct), lambda b, c: (b, 0, 0, c)),
        ),
        compiler_params=pltpu.CompilerParams(
            dimension_semantics=("parallel", "parallel"),
        ),
    )(x_in, w9c, b1c)

    if C != C0 or W != W0:
        out = out[:, :, :W0, :C0]
    return out


def residual_dwconv(x_nchw, weight, bias):
    """NCHW (PyTorch-layout) parity wrapper.  The transposes are full-tensor
    HBM round trips — keep the surrounding model NHWC in production and call
    residual_dwconv_nhwc directly."""
    x_nhwc = jnp.transpose(x_nchw, (0, 2, 3, 1))
    y = residual_dwconv_nhwc(x_nhwc, weight, bias)
    return jnp.transpose(y, (0, 3, 1, 2))


if __name__ == "__main__":
    key = jax.random.PRNGKey(0)
    kx, kw, kb = jax.random.split(key, 3)

    # Small demo at a real EdgeViT-XXS channel width (144): the wrapper pads
    # C -> 256 (two 128-lane tiles), so grid = (B=2, C-tiles=2) = 4 parallel
    # steps; W = 16 keeps (W, C-tile) = (16, 128) fully (8, 128)-aligned.
    B, H, W, C = 2, 16, 16, 144
    x = jax.random.uniform(kx, (B, H, W, C), dtype=jnp.float32)
    weight = jax.random.normal(kw, (C, 1, 3, 3), dtype=jnp.float32) * 0.1
    bias = jax.random.normal(kb, (C,), dtype=jnp.float32) * 0.1

    out = jax.block_until_ready(residual_dwconv_nhwc(x, weight, bias))

    # Pure-JAX reference (NHWC):  x + depthwise_conv3x3(x) + bias.
    w_hwio = jnp.transpose(weight, (2, 3, 1, 0))            # (3, 3, 1, C)
    conv = jax.lax.conv_general_dilated(
        x, w_hwio, window_strides=(1, 1), padding="SAME",
        feature_group_count=C,
        dimension_numbers=("NHWC", "HWIO", "NHWC"))
    ref = x + conv + bias.reshape(1, 1, 1, C)

    assert out.shape == x.shape and out.dtype == x.dtype
    assert jnp.allclose(out, ref, atol=1e-4, rtol=1e-4), "f32 mismatch vs ref"

    # bf16 HBM-boundary path (f32 accumulation in-register).
    out_bf16 = jax.block_until_ready(
        residual_dwconv_nhwc(x.astype(jnp.bfloat16), weight, bias))
    assert out_bf16.dtype == jnp.bfloat16
    assert jnp.allclose(out_bf16.astype(jnp.float32), ref, atol=0.1, rtol=0.1), \
        "bf16 mismatch vs ref"

    # PyTorch-layout (NCHW) parity wrapper — layout plumbing only.
    out_nchw = jax.block_until_ready(
        residual_dwconv(jnp.transpose(x, (0, 3, 1, 2)), weight, bias))
    assert jnp.allclose(jnp.transpose(out_nchw, (0, 2, 3, 1)), ref,
                        atol=1e-4, rtol=1e-4), "NCHW wrapper mismatch"

    print("KERNEL_OK")
</pallas_src>

<mosaic_0001>
module attributes {stable_mosaic.version = 11 : i64} {
  func.func @_residual_dwconv_kernel(%arg0: i32, %arg1: i32, %arg2: memref<1x16x16x128xf32, #tpu.memory_space<vmem>>, %arg3: memref<9x128xf32, #tpu.memory_space<vmem>>, %arg4: memref<1x128xf32, #tpu.memory_space<vmem>>, %arg5: memref<1x16x16x128xf32, #tpu.memory_space<vmem>>) attributes {dimension_semantics = [#tpu.dimension_semantics<parallel>, #tpu.dimension_semantics<parallel>], iteration_bounds = array<i64: 2, 2>, scalar_prefetch = 0 : i64, scratch_operands = 0 : i64, tpu.core_type = #tpu.core_type<tc>, window_params = [{transform_indices = @transform_0, window_bounds = array<i64: 1, 16, 16, 128>}, {transform_indices = @transform_1, window_bounds = array<i64: 9, 128>}, {transform_indices = @transform_2, window_bounds = array<i64: 1, 128>}, {transform_indices = @transform_3, window_bounds = array<i64: 1, 16, 16, 128>}]} {
    %c0 = arith.constant 0 : index
    %c0_0 = arith.constant 0 : index
    %0 = vector.load %arg3[%c0, %c0_0] : memref<9x128xf32, #tpu.memory_space<vmem>>, vector<1x128xf32>
    %1 = vector.shape_cast %0 : vector<1x128xf32> to vector<128xf32>
    %2 = vector.shape_cast %1 : vector<128xf32> to vector<1x128xf32>
    %3 = vector.broadcast %2 : vector<1x128xf32> to vector<16x128xf32>
    %c1 = arith.constant 1 : index
    %c0_1 = arith.constant 0 : index
    %4 = vector.load %arg3[%c1, %c0_1] : memref<9x128xf32, #tpu.memory_space<vmem>>, vector<1x128xf32>
    %5 = vector.shape_cast %4 : vector<1x128xf32> to vector<128xf32>
    %6 = vector.shape_cast %5 : vector<128xf32> to vector<1x128xf32>
    %7 = vector.broadcast %6 : vector<1x128xf32> to vector<16x128xf32>
    %c2 = arith.constant 2 : index
    %c0_2 = arith.constant 0 : index
    %8 = vector.load %arg3[%c2, %c0_2] : memref<9x128xf32, #tpu.memory_space<vmem>>, vector<1x128xf32>
    %9 = vector.shape_cast %8 : vector<1x128xf32> to vector<128xf32>
    %10 = vector.shape_cast %9 : vector<128xf32> to vector<1x128xf32>
    %11 = vector.broadcast %10 : vector<1x128xf32> to vector<16x128xf32>
    %c3 = arith.constant 3 : index
    %c0_3 = arith.constant 0 : index
    %12 = vector.load %arg3[%c3, %c0_3] : memref<9x128xf32, #tpu.memory_space<vmem>>, vector<1x128xf32>
    %13 = vector.shape_cast %12 : vector<1x128xf32> to vector<128xf32>
    %14 = vector.shape_cast %13 : vector<128xf32> to vector<1x128xf32>
    %15 = vector.broadcast %14 : vector<1x128xf32> to vector<16x128xf32>
    %c4 = arith.constant 4 : index
    %c0_4 = arith.constant 0 : index
    %16 = vector.load %arg3[%c4, %c0_4] : memref<9x128xf32, #tpu.memory_space<vmem>>, vector<1x128xf32>
    %17 = vector.shape_cast %16 : vector<1x128xf32> to vector<128xf32>
    %18 = vector.shape_cast %17 : vector<128xf32> to vector<1x128xf32>
    %19 = vector.broadcast %18 : vector<1x128xf32> to vector<16x128xf32>
    %c5 = arith.constant 5 : index
    %c0_5 = arith.constant 0 : index
    %20 = vector.load %arg3[%c5, %c0_5] : memref<9x128xf32, #tpu.memory_space<vmem>>, vector<1x128xf32>
    %21 = vector.shape_cast %20 : vector<1x128xf32> to vector<128xf32>
    %22 = vector.shape_cast %21 : vector<128xf32> to vector<1x128xf32>
    %23 = vector.broadcast %22 : vector<1x128xf32> to vector<16x128xf32>
    %c6 = arith.constant 6 : index
    %c0_6 = arith.constant 0 : index
    %24 = vector.load %arg3[%c6, %c0_6] : memref<9x128xf32, #tpu.memory_space<vmem>>, vector<1x128xf32>
    %25 = vector.shape_cast %24 : vector<1x128xf32> to vector<128xf32>
    %26 = vector.shape_cast %25 : vector<128xf32> to vector<1x128xf32>
    %27 = vector.broadcast %26 : vector<1x128xf32> to vector<16x128xf32>
    %c7 = arith.constant 7 : index
    %c0_7 = arith.constant 0 : index
    %28 = vector.load %arg3[%c7, %c0_7] : memref<9x128xf32, #tpu.memory_space<vmem>>, vector<1x128xf32>
    %29 = vector.shape_cast %28 : vector<1x128xf32> to vector<128xf32>
    %30 = vector.shape_cast %29 : vector<128xf32> to vector<1x128xf32>
    %31 = vector.broadcast %30 : vector<1x128xf32> to vector<16x128xf32>
    %c8 = arith.constant 8 : index
    %c0_8 = arith.constant 0 : index
    %32 = vector.load %arg3[%c8, %c0_8] : memref<9x128xf32, #tpu.memory_space<vmem>>, vector<1x128xf32>
    %33 = vector.shape_cast %32 : vector<1x128xf32> to vector<128xf32>
    %34 = vector.shape_cast %33 : vector<128xf32> to vector<1x128xf32>
    %35 = vector.broadcast %34 : vector<1x128xf32> to vector<16x128xf32>
    %c0_9 = arith.constant 0 : index
    %c0_10 = arith.constant 0 : index
    %36 = vector.load %arg4[%c0_9, %c0_10] : memref<1x128xf32, #tpu.memory_space<vmem>>, vector<1x128xf32>
    %37 = vector.shape_cast %36 : vector<1x128xf32> to vector<128xf32>
    %38 = vector.shape_cast %37 : vector<128xf32> to vector<1x128xf32>
    %39 = vector.broadcast %38 : vector<1x128xf32> to vector<16x128xf32>
    %40 = tpu.iota {dimensions = array<i32: 0>} : vector<16x128xi32>
    %c0_i32 = arith.constant 0 : i32
    %41 = vector.broadcast %c0_i32 : i32 to vector<16x128xi32>
    %42 = arith.cmpi sgt, %40, %41 : vector<16x128xi32>
    %43 = arith.extui %42 : vector<16x128xi1> to vector<16x128xi32>
    %44 = arith.sitofp %43 : vector<16x128xi32> to vector<16x128xf32>
    %c15_i32 = arith.constant 15 : i32
    %45 = vector.broadcast %c15_i32 : i32 to vector<16x128xi32>
    %46 = arith.cmpi slt, %40, %45 : vector<16x128xi32>
    %47 = arith.extui %46 : vector<16x128xi1> to vector<16x128xi32>
    %48 = arith.sitofp %47 : vector<16x128xi32> to vector<16x128xf32>
    %c0_i32_11 = arith.constant 0 : i32
    %c1_i32 = arith.constant 1 : i32
    %49 = arith.subi %c0_i32_11, %c1_i32 : i32
    %c0_i32_12 = arith.constant 0 : i32
    %50 = arith.maxsi %49, %c0_i32_12 : i32
    %c1_i32_13 = arith.constant 1 : i32
    %51 = arith.addi %c0_i32_11, %c1_i32_13 : i32
    %c15_i32_14 = arith.constant 15 : i32
    %52 = arith.minsi %51, %c15_i32_14 : i32
    %c0_i32_15 = arith.constant 0 : i32
    %53 = arith.cmpi sgt, %c0_i32_11, %c0_i32_15 : i32
    %cst = arith.constant 1.000000e+00 : f32
    %cst_16 = arith.constant 0.000000e+00 : f32
    %54 = arith.select %53, %cst, %cst_16 : f32
    %c15_i32_17 = arith.constant 15 : i32
    %55 = arith.cmpi slt, %c0_i32_11, %c15_i32_17 : i32
    %cst_18 = arith.constant 1.000000e+00 : f32
    %cst_19 = arith.constant 0.000000e+00 : f32
    %56 = arith.select %55, %cst_18, %cst_19 : f32
    %c0_20 = arith.constant 0 : index
    %57 = arith.index_cast %50 : i32 to index
    %c0_21 = arith.constant 0 : index
    %c0_22 = arith.constant 0 : index
    %58 = vector.load %arg2[%c0_20, %57, %c0_21, %c0_22] : memref<1x16x16x128xf32, #tpu.memory_space<vmem>>, vector<1x1x16x128xf32>
    %59 = vector.shape_cast %58 : vector<1x1x16x128xf32> to vector<16x128xf32>
    %60 = vector.broadcast %54 : f32 to vector<16x128xf32>
    %61 = arith.mulf %59, %60 : vector<16x128xf32>
    %c0_23 = arith.constant 0 : index
    %62 = arith.index_cast %c0_i32_11 : i32 to index
    %c0_24 = arith.constant 0 : index
    %c0_25 = arith.constant 0 : index
    %63 = vector.load %arg2[%c0_23, %62, %c0_24, %c0_25] : memref<1x16x16x128xf32, #tpu.memory_space<vmem>>, vector<1x1x16x128xf32>
    %64 = vector.shape_cast %63 : vector<1x1x16x128xf32> to vector<16x128xf32>
    %c0_26 = arith.constant 0 : index
    %65 = arith.index_cast %52 : i32 to index
    %c0_27 = arith.constant 0 : index
    %c0_28 = arith.constant 0 : index
    %66 = vector.load %arg2[%c0_26, %65, %c0_27, %c0_28] : memref<1x16x16x128xf32, #tpu.memory_space<vmem>>, vector<1x1x16x128xf32>
    %67 = vector.shape_cast %66 : vector<1x1x16x128xf32> to vector<16x128xf32>
    %68 = vector.broadcast %56 : f32 to vector<16x128xf32>
    %69 = arith.mulf %67, %68 : vector<16x128xf32>
    %70 = arith.mulf %3, %61 : vector<16x128xf32>
    %71 = arith.mulf %15, %64 : vector<16x128xf32>
    %72 = arith.addf %70, %71 : vector<16x128xf32>
    %73 = arith.mulf %27, %69 : vector<16x128xf32>
    %74 = arith.addf %72, %73 : vector<16x128xf32>
    %75 = arith.mulf %7, %61 : vector<16x128xf32>
    %76 = arith.mulf %19, %64 : vector<16x128xf32>
    %77 = arith.addf %75, %76 : vector<16x128xf32>
    %78 = arith.mulf %31, %69 : vector<16x128xf32>
    %79 = arith.addf %77, %78 : vector<16x128xf32>
    %80 = arith.mulf %11, %61 : vector<16x128xf32>
    %81 = arith.mulf %23, %64 : vector<16x128xf32>
    %82 = arith.addf %80, %81 : vector<16x128xf32>
    %83 = arith.mulf %35, %69 : vector<16x128xf32>
    %84 = arith.addf %82, %83 : vector<16x128xf32>
    %85 = arith.addf %79, %39 : vector<16x128xf32>
    %c1_i32_29 = arith.constant 1 : i32
    %86 = tpu.dynamic_rotate %74 by %c1_i32_29 dim 0 : vector<16x128xf32>, i32 -> vector<16x128xf32>
    %87 = arith.mulf %44, %86 : vector<16x128xf32>
    %88 = arith.addf %85, %87 : vector<16x128xf32>
    %c15_i32_30 = arith.constant 15 : i32
    %89 = tpu.dynamic_rotate %84 by %c15_i32_30 dim 0 : vector<16x128xf32>, i32 -> vector<16x128xf32>
    %90 = arith.mulf %48, %89 : vector<16x128xf32>
    %91 = arith.addf %88, %90 : vector<16x128xf32>
    %c0_31 = arith.constant 0 : index
    %92 = arith.index_cast %c0_i32_11 : i32 to index
    %c0_32 = arith.constant 0 : index
    %c0_33 = arith.constant 0 : index
    %93 = vector.load %arg5[%c0_31, %92, %c0_32, %c0_33] : memref<1x16x16x128xf32, #tpu.memory_space<vmem>>, vector<1x1x16x128xf32>
    %94 = vector.shape_cast %93 : vector<1x1x16x128xf32> to vector<16x128xf32>
    %95 = vector.shape_cast %91 : vector<16x128xf32> to vector<1x1x16x128xf32>
    tpu.vector_store %arg5[%c0_31, %92, %c0_32, %c0_33], %95 {strides = array<i32>} : memref<1x16x16x128xf32, #tpu.memory_space<vmem>>, vector<1x1x16x128xf32>,
    %c1_i32_34 = arith.constant 1 : i32
    %c1_i32_35 = arith.constant 1 : i32
    %96 = arith.subi %c1_i32_34, %c1_i32_35 : i32
    %c0_i32_36 = arith.constant 0 : i32
    %97 = arith.maxsi %96, %c0_i32_36 : i32
    %c1_i32_37 = arith.constant 1 : i32
    %98 = arith.addi %c1_i32_34, %c1_i32_37 : i32
    %c15_i32_38 = arith.constant 15 : i32
    %99 = arith.minsi %98, %c15_i32_38 : i32
    %c0_i32_39 = arith.constant 0 : i32
    %100 = arith.cmpi sgt, %c1_i32_34, %c0_i32_39 : i32
    %cst_40 = arith.constant 1.000000e+00 : f32
    %cst_41 = arith.constant 0.000000e+00 : f32
    %101 = arith.select %100, %cst_40, %cst_41 : f32
    %c15_i32_42 = arith.constant 15 : i32
    %102 = arith.cmpi slt, %c1_i32_34, %c15_i32_42 : i32
    %cst_43 = arith.constant 1.000000e+00 : f32
    %cst_44 = arith.constant 0.000000e+00 : f32
    %103 = arith.select %102, %cst_43, %cst_44 : f32
    %c0_45 = arith.constant 0 : index
    %104 = arith.index_cast %97 : i32 to index
    %c0_46 = arith.constant 0 : index
    %c0_47 = arith.constant 0 : index
    %105 = vector.load %arg2[%c0_45, %104, %c0_46, %c0_47] : memref<1x16x16x128xf32, #tpu.memory_space<vmem>>, vector<1x1x16x128xf32>
    %106 = vector.shape_cast %105 : vector<1x1x16x128xf32> to vector<16x128xf32>
    %107 = vector.broadcast %101 : f32 to vector<16x128xf32>
    %108 = arith.mulf %106, %107 : vector<16x128xf32>
    %c0_48 = arith.constant 0 : index
    %109 = arith.index_cast %c1_i32_34 : i32 to index
    %c0_49 = arith.constant 0 : index
    %c0_50 = arith.constant 0 : index
    %110 = vector.load %arg2[%c0_48, %109, %c0_49, %c0_50] : memref<1x16x16x128xf32, #tpu.memory_space<vmem>>, vector<1x1x16x128xf32>
    %111 = vector.shape_cast %110 : vector<1x1x16x128xf32> to vector<16x128xf32>
    %c0_51 = arith.constant 0 : index
    %112 = arith.index_cast %99 : i32 to index
    %c0_52 = arith.constant 0 : index
    %c0_53 = arith.constant 0 : index
    %113 = vector.load %arg2[%c0_51, %112, %c0_52, %c0_53] : memref<1x16x16x128xf32, #tpu.memory_space<vmem>>, vector<1x1x16x128xf32>
    %114 = vector.shape_cast %113 : vector<1x1x16x128xf32> to vector<16x128xf32>
    %115 = vector.broadcast %103 : f32 to vector<16x128xf32>
    %116 = arith.mulf %114, %115 : vector<16x128xf32>
    %117 = arith.mulf %3, %108 : vector<16x128xf32>
    %118 = arith.mulf %15, %111 : vector<16x128xf32>
    %119 = arith.addf %117, %118 : vector<16x128xf32>
    %120 = arith.mulf %27, %116 : vector<16x128xf32>
    %121 = arith.addf %119, %120 : vector<16x128xf32>
    %122 = arith.mulf %7, %108 : vector<16x128xf32>
    %123 = arith.mulf %19, %111 : vector<16x128xf32>
    %124 = arith.addf %122, %123 : vector<16x128xf32>
    %125 = arith.mulf %31, %116 : vector<16x128xf32>
    %126 = arith.addf %124, %125 : vector<16x128xf32>
    %127 = arith.mulf %11, %108 : vector<16x128xf32>
    %128 = arith.mulf %23, %111 : vector<16x128xf32>
    %129 = arith.addf %127, %128 : vector<16x128xf32>
    %130 = arith.mulf %35, %116 : vector<16x128xf32>
    %131 = arith.addf %129, %130 : vector<16x128xf32>
    %132 = arith.addf %126, %39 : vector<16x128xf32>
    %c1_i32_54 = arith.constant 1 : i32
    %133 = tpu.dynamic_rotate %121 by %c1_i32_54 dim 0 : vector<16x128xf32>, i32 -> vector<16x128xf32>
    %134 = arith.mulf %44, %133 : vector<16x128xf32>
    %135 = arith.addf %132, %134 : vector<16x128xf32>
    %c15_i32_55 = arith.constant 15 : i32
    %136 = tpu.dynamic_rotate %131 by %c15_i32_55 dim 0 : vector<16x128xf32>, i32 -> vector<16x128xf32>
    %137 = arith.mulf %48, %136 : vector<16x128xf32>
    %138 = arith.addf %135, %137 : vector<16x128xf32>
    %c0_56 = arith.constant 0 : index
    %139 = arith.index_cast %c1_i32_34 : i32 to index
    %c0_57 = arith.constant 0 : index
    %c0_58 = arith.constant 0 : index
    %140 = vector.load %arg5[%c0_56, %139, %c0_57, %c0_58] : memref<1x16x16x128xf32, #tpu.memory_space<vmem>>, vector<1x1x16x128xf32>
    %141 = vector.shape_cast %140 : vector<1x1x16x128xf32> to vector<16x128xf32>
    %142 = vector.shape_cast %138 : vector<16x128xf32> to vector<1x1x16x128xf32>
    tpu.vector_store %arg5[%c0_56, %139, %c0_57, %c0_58], %142 {strides = array<i32>} : memref<1x16x16x128xf32, #tpu.memory_space<vmem>>, vector<1x1x16x128xf32>,
    %c2_i32 = arith.constant 2 : i32
    %c1_i32_59 = arith.constant 1 : i32
    %143 = arith.subi %c2_i32, %c1_i32_59 : i32
    %c0_i32_60 = arith.constant 0 : i32
    %144 = arith.maxsi %143, %c0_i32_60 : i32
    %c1_i32_61 = arith.constant 1 : i32
    %145 = arith.addi %c2_i32, %c1_i32_61 : i32
    %c15_i32_62 = arith.constant 15 : i32
    %146 = arith.minsi %145, %c15_i32_62 : i32
    %c0_i32_63 = arith.constant 0 : i32
    %147 = arith.cmpi sgt, %c2_i32, %c0_i32_63 : i32
    %cst_64 = arith.constant 1.000000e+00 : f32
    %cst_65 = arith.constant 0.000000e+00 : f32
    %148 = arith.select %147, %cst_64, %cst_65 : f32
    %c15_i32_66 = arith.constant 15 : i32
    %149 = arith.cmpi slt, %c2_i32, %c15_i32_66 : i32
    %cst_67 = arith.constant 1.000000e+00 : f32
    %cst_68 = arith.constant 0.000000e+00 : f32
    %150 = arith.select %149, %cst_67, %cst_68 : f32
    %c0_69 = arith.constant 0 : index
    %151 = arith.index_cast %144 : i32 to index
    %c0_70 = arith.constant 0 : index
    %c0_71 = arith.constant 0 : index
    %152 = vector.load %arg2[%c0_69, %151, %c0_70, %c0_71] : memref<1x16x16x128xf32, #tpu.memory_space<vmem>>, vector<1x1x16x128xf32>
    %153 = vector.shape_cast %152 : vector<1x1x16x128xf32> to vector<16x128xf32>
    %154 = vector.broadcast %148 : f32 to vector<16x128xf32>
    %155 = arith.mulf %153, %154 : vector<16x128xf32>
    %c0_72 = arith.constant 0 : index
    %156 = arith.index_cast %c2_i32 : i32 to index
    %c0_73 = arith.constant 0 : index
    %c0_74 = arith.constant 0 : index
    %157 = vector.load %arg2[%c0_72, %156, %c0_73, %c0_74] : memref<1x16x16x128xf32, #tpu.memory_space<vmem>>, vector<1x1x16x128xf32>
    %158 = vector.shape_cast %157 : vector<1x1x16x128xf32> to vector<16x128xf32>
    %c0_75 = arith.constant 0 : index
    %159 = arith.index_cast %146 : i32 to index
    %c0_76 = arith.constant 0 : index
    %c0_77 = arith.constant 0 : index
    %160 = vector.load %arg2[%c0_75, %159, %c0_76, %c0_77] : memref<1x16x16x128xf32, #tpu.memory_space<vmem>>, vector<1x1x16x128xf32>
    %161 = vector.shape_cast %160 : vector<1x1x16x128xf32> to vector<16x128xf32>
    %162 = vector.broadcast %150 : f32 to vector<16x128xf32>
    %163 = arith.mulf %161, %162 : vector<16x128xf32>
    %164 = arith.mulf %3, %155 : vector<16x128xf32>
    %165 = arith.mulf %15, %158 : vector<16x128xf32>
    %166 = arith.addf %164, %165 : vector<16x128xf32>
    %167 = arith.mulf %27, %163 : vector<16x128xf32>
    %168 = arith.addf %166, %167 : vector<16x128xf32>
    %169 = arith.mulf %7, %155 : vector<16x128xf32>
    %170 = arith.mulf %19, %158 : vector<16x128xf32>
    %171 = arith.addf %169, %170 : vector<16x128xf32>
    %172 = arith.mulf %31, %163 : vector<16x128xf32>
    %173 = arith.addf %171, %172 : vector<16x128xf32>
    %174 = arith.mulf %11, %155 : vector<16x128xf32>
    %175 = arith.mulf %23, %158 : vector<16x128xf32>
    %176 = arith.addf %174, %175 : vector<16x128xf32>
    %177 = arith.mulf %35, %163 : vector<16x128xf32>
    %178 = arith.addf %176, %177 : vector<16x128xf32>
    %179 = arith.addf %173, %39 : vector<16x128xf32>
    %c1_i32_78 = arith.constant 1 : i32
    %180 = tpu.dynamic_rotate %168 by %c1_i32_78 dim 0 : vector<16x128xf32>, i32 -> vector<16x128xf32>
    %181 = arith.mulf %44, %180 : vector<16x128xf32>
    %182 = arith.addf %179, %181 : vector<16x128xf32>
    %c15_i32_79 = arith.constant 15 : i32
    %183 = tpu.dynamic_rotate %178 by %c15_i32_79 dim 0 : vector<16x128xf32>, i32 -> vector<16x128xf32>
    %184 = arith.mulf %48, %183 : vector<16x128xf32>
    %185 = arith.addf %182, %184 : vector<16x128xf32>
    %c0_80 = arith.constant 0 : index
    %186 = arith.index_cast %c2_i32 : i32 to index
    %c0_81 = arith.constant 0 : index
    %c0_82 = arith.constant 0 : index
    %187 = vector.load %arg5[%c0_80, %186, %c0_81, %c0_82] : memref<1x16x16x128xf32, #tpu.memory_space<vmem>>, vector<1x1x16x128xf32>
    %188 = vector.shape_cast %187 : vector<1x1x16x128xf32> to vector<16x128xf32>
    %189 = vector.shape_cast %185 : vector<16x128xf32> to vector<1x1x16x128xf32>
    tpu.vector_store %arg5[%c0_80, %186, %c0_81, %c0_82], %189 {strides = array<i32>} : memref<1x16x16x128xf32, #tpu.memory_space<vmem>>, vector<1x1x16x128xf32>,
    %c3_i32 = arith.constant 3 : i32
    %c1_i32_83 = arith.constant 1 : i32
    %190 = arith.subi %c3_i32, %c1_i32_83 : i32
    %c0_i32_84 = arith.constant 0 : i32
    %191 = arith.maxsi %190, %c0_i32_84 : i32
    %c1_i32_85 = arith.constant 1 : i32
    %192 = arith.addi %c3_i32, %c1_i32_85 : i32
    %c15_i32_86 = arith.constant 15 : i32
    %193 = arith.minsi %192, %c15_i32_86 : i32
    %c0_i32_87 = arith.constant 0 : i32
    %194 = arith.cmpi sgt, %c3_i32, %c0_i32_87 : i32
    %cst_88 = arith.constant 1.000000e+00 : f32
    %cst_89 = arith.constant 0.000000e+00 : f32
    %195 = arith.select %194, %cst_88, %cst_89 : f32
    %c15_i32_90 = arith.constant 15 : i32
    %196 = arith.cmpi slt, %c3_i32, %c15_i32_90 : i32
    %cst_91 = arith.constant 1.000000e+00 : f32
    %cst_92 = arith.constant 0.000000e+00 : f32
    %197 = arith.select %196, %cst_91, %cst_92 : f32
    %c0_93 = arith.constant 0 : index
    %198 = arith.index_cast %191 : i32 to index
    %c0_94 = arith.constant 0 : index
    %c0_95 = arith.constant 0 : index
    %199 = vector.load %arg2[%c0_93, %198, %c0_94, %c0_95] : memref<1x16x16x128xf32, #tpu.memory_space<vmem>>, vector<1x1x16x128xf32>
    %200 = vector.shape_cast %199 : vector<1x1x16x128xf32> to vector<16x128xf32>
    %201 = vector.broadcast %195 : f32 to vector<16x128xf32>
    %202 = arith.mulf %200, %201 : vector<16x128xf32>
    %c0_96 = arith.constant 0 : index
    %203 = arith.index_cast %c3_i32 : i32 to index
    %c0_97 = arith.constant 0 : index
    %c0_98 = arith.constant 0 : index
    %204 = vector.load %arg2[%c0_96, %203, %c0_97, %c0_98] : memref<1x16x16x128xf32, #tpu.memory_space<vmem>>, vector<1x1x16x128xf32>
    %205 = vector.shape_cast %204 : vector<1x1x16x128xf32> to vector<16x128xf32>
    %c0_99 = arith.constant 0 : index
    %206 = arith.index_cast %193 : i32 to index
    %c0_100 = arith.constant 0 : index
    %c0_101 = arith.constant 0 : index
    %207 = vector.load %arg2[%c0_99, %206, %c0_100, %c0_101] : memref<1x16x16x128xf32, #tpu.memory_space<vmem>>, vector<1x1x16x128xf32>
    %208 = vector.shape_cast %207 : vector<1x1x16x128xf32> to vector<16x128xf32>
    %209 = vector.broadcast %197 : f32 to vector<16x128xf32>
    %210 = arith.mulf %208, %209 : vector<16x128xf32>
    %211 = arith.mulf %3, %202 : vector<16x128xf32>
    %212 = arith.mulf %15, %205 : vector<16x128xf32>
    %213 = arith.addf %211, %212 : vector<16x128xf32>
    %214 = arith.mulf %27, %210 : vector<16x128xf32>
    %215 = arith.addf %213, %214 : vector<16x128xf32>
    %216 = arith.mulf %7, %202 : vector<16x128xf32>
    %217 = arith.mulf %19, %205 : vector<16x128xf32>
    %218 = arith.addf %216, %217 : vector<16x128xf32>
    %219 = arith.mulf %31, %210 : vector<16x128xf32>
    %220 = arith.addf %218, %219 : vector<16x128xf32>
    %221 = arith.mulf %11, %202 : vector<16x128xf32>
    %222 = arith.mulf %23, %205 : vector<16x128xf32>
    %223 = arith.addf %221, %222 : vector<16x128xf32>
    %224 = arith.mulf %35, %210 : vector<16x128xf32>
    %225 = arith.addf %223, %224 : vector<16x128xf32>
    %226 = arith.addf %220, %39 : vector<16x128xf32>
    %c1_i32_102 = arith.constant 1 : i32
    %227 = tpu.dynamic_rotate %215 by %c1_i32_102 dim 0 : vector<16x128xf32>, i32 -> vector<16x128xf32>
    %228 = arith.mulf %44, %227 : vector<16x128xf32>
    %229 = arith.addf %226, %228 : vector<16x128xf32>
    %c15_i32_103 = arith.constant 15 : i32
    %230 = tpu.dynamic_rotate %225 by %c15_i32_103 dim 0 : vector<16x128xf32>, i32 -> vector<16x128xf32>
    %231 = arith.mulf %48, %230 : vector<16x128xf32>
    %232 = arith.addf %229, %231 : vector<16x128xf32>
    %c0_104 = arith.constant 0 : index
    %233 = arith.index_cast %c3_i32 : i32 to index
    %c0_105 = arith.constant 0 : index
    %c0_106 = arith.constant 0 : index
    %234 = vector.load %arg5[%c0_104, %233, %c0_105, %c0_106] : memref<1x16x16x128xf32, #tpu.memory_space<vmem>>, vector<1x1x16x128xf32>
    %235 = vector.shape_cast %234 : vector<1x1x16x128xf32> to vector<16x128xf32>
    %236 = vector.shape_cast %232 : vector<16x128xf32> to vector<1x1x16x128xf32>
    tpu.vector_store %arg5[%c0_104, %233, %c0_105, %c0_106], %236 {strides = array<i32>} : memref<1x16x16x128xf32, #tpu.memory_space<vmem>>, vector<1x1x16x128xf32>,
    %c4_i32 = arith.constant 4 : i32
    %c1_i32_107 = arith.constant 1 : i32
    %237 = arith.subi %c4_i32, %c1_i32_107 : i32
    %c0_i32_108 = arith.constant 0 : i32
    %238 = arith.maxsi %237, %c0_i32_108 : i32
    %c1_i32_109 = arith.constant 1 : i32
    %239 = arith.addi %c4_i32, %c1_i32_109 : i32
    %c15_i32_110 = arith.constant 15 : i32
    %240 = arith.minsi %239, %c15_i32_110 : i32
    %c0_i32_111 = arith.constant 0 : i32
    %241 = arith.cmpi sgt, %c4_i32, %c0_i32_111 : i32
    %cst_112 = arith.constant 1.000000e+00 : f32
    %cst_113 = arith.constant 0.000000e+00 : f32
    %242 = arith.select %241, %cst_112, %cst_113 : f32
    %c15_i32_114 = arith.constant 15 : i32
    %243 = arith.cmpi slt, %c4_i32, %c15_i32_114 : i32
    %cst_115 = arith.constant 1.000000e+00 : f32
    %cst_116 = arith.constant 0.000000e+00 : f32
    %244 = arith.select %243, %cst_115, %cst_116 : f32
    %c0_117 = arith.constant 0 : index
    %245 = arith.index_cast %238 : i32 to index
    %c0_118 = arith.constant 0 : index
    %c0_119 = arith.constant 0 : index
    %246 = vector.load %arg2[%c0_117, %245, %c0_118, %c0_119] : memref<1x16x16x128xf32, #tpu.memory_space<vmem>>, vector<1x1x16x128xf32>
    %247 = vector.shape_cast %246 : vector<1x1x16x128xf32> to vector<16x128xf32>
    %248 = vector.broadcast %242 : f32 to vector<16x128xf32>
    %249 = arith.mulf %247, %248 : vector<16x128xf32>
    %c0_120 = arith.constant 0 : index
    %250 = arith.index_cast %c4_i32 : i32 to index
    %c0_121 = arith.constant 0 : index
    %c0_122 = arith.constant 0 : index
    %251 = vector.load %arg2[%c0_120, %250, %c0_121, %c0_122] : memref<1x16x16x128xf32, #tpu.memory_space<vmem>>, vector<1x1x16x128xf32>
    %252 = vector.shape_cast %251 : vector<1x1x16x128xf32> to vector<16x128xf32>
    %c0_123 = arith.constant 0 : index
    %253 = arith.index_cast %240 : i32 to index
    %c0_124 = arith.constant 0 : index
    %c0_125 = arith.constant 0 : index
    %254 = vector.load %arg2[%c0_123, %253, %c0_124, %c0_125] : memref<1x16x16x128xf32, #tpu.memory_space<vmem>>, vector<1x1x16x128xf32>
    %255 = vector.shape_cast %254 : vector<1x1x16x128xf32> to vector<16x128xf32>
    %256 = vector.broadcast %244 : f32 to vector<16x128xf32>
    %257 = arith.mulf %255, %256 : vector<16x128xf32>
    %258 = arith.mulf %3, %249 : vector<16x128xf32>
    %259 = arith.mulf %15, %252 : vector<16x128xf32>
    %260 = arith.addf %258, %259 : vector<16x128xf32>
    %261 = arith.mulf %27, %257 : vector<16x128xf32>
    %262 = arith.addf %260, %261 : vector<16x128xf32>
    %263 = arith.mulf %7, %249 : vector<16x128xf32>
    %264 = arith.mulf %19, %252 : vector<16x128xf32>
    %265 = arith.addf %263, %264 : vector<16x128xf32>
    %266 = arith.mulf %31, %257 : vector<16x128xf32>
    %267 = arith.addf %265, %266 : vector<16x128xf32>
    %268 = arith.mulf %11, %249 : vector<16x128xf32>
    %269 = arith.mulf %23, %252 : vector<16x128xf32>
    %270 = arith.addf %268, %269 : vector<16x128xf32>
    %271 = arith.mulf %35, %257 : vector<16x128xf32>
    %272 = arith.addf %270, %271 : vector<16x128xf32>
    %273 = arith.addf %267, %39 : vector<16x128xf32>
    %c1_i32_126 = arith.constant 1 : i32
    %274 = tpu.dynamic_rotate %262 by %c1_i32_126 dim 0 : vector<16x128xf32>, i32 -> vector<16x128xf32>
    %275 = arith.mulf %44, %274 : vector<16x128xf32>
    %276 = arith.addf %273, %275 : vector<16x128xf32>
    %c15_i32_127 = arith.constant 15 : i32
    %277 = tpu.dynamic_rotate %272 by %c15_i32_127 dim 0 : vector<16x128xf32>, i32 -> vector<16x128xf32>
    %278 = arith.mulf %48, %277 : vector<16x128xf32>
    %279 = arith.addf %276, %278 : vector<16x128xf32>
    %c0_128 = arith.constant 0 : index
    %280 = arith.index_cast %c4_i32 : i32 to index
    %c0_129 = arith.constant 0 : index
    %c0_130 = arith.constant 0 : index
    %281 = vector.load %arg5[%c0_128, %280, %c0_129, %c0_130] : memref<1x16x16x128xf32, #tpu.memory_space<vmem>>, vector<1x1x16x128xf32>
    %282 = vector.shape_cast %281 : vector<1x1x16x128xf32> to vector<16x128xf32>
    %283 = vector.shape_cast %279 : vector<16x128xf32> to vector<1x1x16x128xf32>
    tpu.vector_store %arg5[%c0_128, %280, %c0_129, %c0_130], %283 {strides = array<i32>} : memref<1x16x16x128xf32, #tpu.memory_space<vmem>>, vector<1x1x16x128xf32>,
    %c5_i32 = arith.constant 5 : i32
    %c1_i32_131 = arith.constant 1 : i32
    %284 = arith.subi %c5_i32, %c1_i32_131 : i32
    %c0_i32_132 = arith.constant 0 : i32
    %285 = arith.maxsi %284, %c0_i32_132 : i32
    %c1_i32_133 = arith.constant 1 : i32
    %286 = arith.addi %c5_i32, %c1_i32_133 : i32
    %c15_i32_134 = arith.constant 15 : i32
    %287 = arith.minsi %286, %c15_i32_134 : i32
    %c0_i32_135 = arith.constant 0 : i32
    %288 = arith.cmpi sgt, %c5_i32, %c0_i32_135 : i32
    %cst_136 = arith.constant 1.000000e+00 : f32
    %cst_137 = arith.constant 0.000000e+00 : f32
    %289 = arith.select %288, %cst_136, %cst_137 : f32
    %c15_i32_138 = arith.constant 15 : i32
    %290 = arith.cmpi slt, %c5_i32, %c15_i32_138 : i32
    %cst_139 = arith.constant 1.000000e+00 : f32
    %cst_140 = arith.constant 0.000000e+00 : f32
    %291 = arith.select %290, %cst_139, %cst_140 : f32
    %c0_141 = arith.constant 0 : index
    %292 = arith.index_cast %285 : i32 to index
    %c0_142 = arith.constant 0 : index
    %c0_143 = arith.constant 0 : index
    %293 = vector.load %arg2[%c0_141, %292, %c0_142, %c0_143] : memref<1x16x16x128xf32, #tpu.memory_space<vmem>>, vector<1x1x16x128xf32>
    %294 = vector.shape_cast %293 : vector<1x1x16x128xf32> to vector<16x128xf32>
    %295 = vector.broadcast %289 : f32 to vector<16x128xf32>
    %296 = arith.mulf %294, %295 : vector<16x128xf32>
    %c0_144 = arith.constant 0 : index
    %297 = arith.index_cast %c5_i32 : i32 to index
    %c0_145 = arith.constant 0 : index
    %c0_146 = arith.constant 0 : index
    %298 = vector.load %arg2[%c0_144, %297, %c0_145, %c0_146] : memref<1x16x16x128xf32, #tpu.memory_space<vmem>>, vector<1x1x16x128xf32>
    %299 = vector.shape_cast %298 : vector<1x1x16x128xf32> to vector<16x128xf32>
    %c0_147 = arith.constant 0 : index
    %300 = arith.index_cast %287 : i32 to index
    %c0_148 = arith.constant 0 : index
    %c0_149 = arith.constant 0 : index
    %301 = vector.load %arg2[%c0_147, %300, %c0_148, %c0_149] : memref<1x16x16x128xf32, #tpu.memory_space<vmem>>, vector<1x1x16x128xf32>
    %302 = vector.shape_cast %301 : vector<1x1x16x128xf32> to vector<16x128xf32>
    %303 = vector.broadcast %291 : f32 to vector<16x128xf32>
    %304 = arith.mulf %302, %303 : vector<16x128xf32>
    %305 = arith.mulf %3, %296 : vector<16x128xf32>
    %306 = arith.mulf %15, %299 : vector<16x128xf32>
    %307 = arith.addf %305, %306 : vector<16x128xf32>
    %308 = arith.mulf %27, %304 : vector<16x128xf32>
    %309 = arith.addf %307, %308 : vector<16x128xf32>
    %310 = arith.mulf %7, %296 : vector<16x128xf32>
    %311 = arith.mulf %19, %299 : vector<16x128xf32>
    %312 = arith.addf %310, %311 : vector<16x128xf32>
    %313 = arith.mulf %31, %304 : vector<16x128xf32>
    %314 = arith.addf %312, %313 : vector<16x128xf32>
    %315 = arith.mulf %11, %296 : vector<16x128xf32>
    %316 = arith.mulf %23, %299 : vector<16x128xf32>
    %317 = arith.addf %315, %316 : vector<16x128xf32>
    %318 = arith.mulf %35, %304 : vector<16x128xf32>
    %319 = arith.addf %317, %318 : vector<16x128xf32>
    %320 = arith.addf %314, %39 : vector<16x128xf32>
    %c1_i32_150 = arith.constant 1 : i32
    %321 = tpu.dynamic_rotate %309 by %c1_i32_150 dim 0 : vector<16x128xf32>, i32 -> vector<16x128xf32>
    %322 = arith.mulf %44, %321 : vector<16x128xf32>
    %323 = arith.addf %320, %322 : vector<16x128xf32>
    %c15_i32_151 = arith.constant 15 : i32
    %324 = tpu.dynamic_rotate %319 by %c15_i32_151 dim 0 : vector<16x128xf32>, i32 -> vector<16x128xf32>
    %325 = arith.mulf %48, %324 : vector<16x128xf32>
    %326 = arith.addf %323, %325 : vector<16x128xf32>
    %c0_152 = arith.constant 0 : index
    %327 = arith.index_cast %c5_i32 : i32 to index
    %c0_153 = arith.constant 0 : index
    %c0_154 = arith.constant 0 : index
    %328 = vector.load %arg5[%c0_152, %327, %c0_153, %c0_154] : memref<1x16x16x128xf32, #tpu.memory_space<vmem>>, vector<1x1x16x128xf32>
    %329 = vector.shape_cast %328 : vector<1x1x16x128xf32> to vector<16x128xf32>
    %330 = vector.shape_cast %326 : vector<16x128xf32> to vector<1x1x16x128xf32>
    tpu.vector_store %arg5[%c0_152, %327, %c0_153, %c0_154], %330 {strides = array<i32>} : memref<1x16x16x128xf32, #tpu.memory_space<vmem>>, vector<1x1x16x128xf32>,
    %c6_i32 = arith.constant 6 : i32
    %c1_i32_155 = arith.constant 1 : i32
    %331 = arith.subi %c6_i32, %c1_i32_155 : i32
    %c0_i32_156 = arith.constant 0 : i32
    %332 = arith.maxsi %331, %c0_i32_156 : i32
    %c1_i32_157 = arith.constant 1 : i32
    %333 = arith.addi %c6_i32, %c1_i32_157 : i32
    %c15_i32_158 = arith.constant 15 : i32
    %334 = arith.minsi %333, %c15_i32_158 : i32
    %c0_i32_159 = arith.constant 0 : i32
    %335 = arith.cmpi sgt, %c6_i32, %c0_i32_159 : i32
    %cst_160 = arith.constant 1.000000e+00 : f32
    %cst_161 = arith.constant 0.000000e+00 : f32
    %336 = arith.select %335, %cst_160, %cst_161 : f32
    %c15_i32_162 = arith.constant 15 : i32
    %337 = arith.cmpi slt, %c6_i32, %c15_i32_162 : i32
    %cst_163 = arith.constant 1.000000e+00 : f32
    %cst_164 = arith.constant 0.000000e+00 : f32
    %338 = arith.select %337, %cst_163, %cst_164 : f32
    %c0_165 = arith.constant 0 : index
    %339 = arith.index_cast %332 : i32 to index
    %c0_166 = arith.constant 0 : index
    %c0_167 = arith.constant 0 : index
    %340 = vector.load %arg2[%c0_165, %339, %c0_166, %c0_167] : memref<1x16x16x128xf32, #tpu.memory_space<vmem>>, vector<1x1x16x128xf32>
    %341 = vector.shape_cast %340 : vector<1x1x16x128xf32> to vector<16x128xf32>
    %342 = vector.broadcast %336 : f32 to vector<16x128xf32>
    %343 = arith.mulf %341, %342 : vector<16x128xf32>
    %c0_168 = arith.constant 0 : index
    %344 = arith.index_cast %c6_i32 : i32 to index
    %c0_169 = arith.constant 0 : index
    %c0_170 = arith.constant 0 : index
    %345 = vector.load %arg2[%c0_168, %344, %c0_169, %c0_170] : memref<1x16x16x128xf32, #tpu.memory_space<vmem>>, vector<1x1x16x128xf32>
    %346 = vector.shape_cast %345 : vector<1x1x16x128xf32> to vector<16x128xf32>
    %c0_171 = arith.constant 0 : index
    %347 = arith.index_cast %334 : i32 to index
    %c0_172 = arith.constant 0 : index
    %c0_173 = arith.constant 0 : index
    %348 = vector.load %arg2[%c0_171, %347, %c0_172, %c0_173] : memref<1x16x16x128xf32, #tpu.memory_space<vmem>>, vector<1x1x16x128xf32>
    %349 = vector.shape_cast %348 : vector<1x1x16x128xf32> to vector<16x128xf32>
    %350 = vector.broadcast %338 : f32 to vector<16x128xf32>
    %351 = arith.mulf %349, %350 : vector<16x128xf32>
    %352 = arith.mulf %3, %343 : vector<16x128xf32>
    %353 = arith.mulf %15, %346 : vector<16x128xf32>
    %354 = arith.addf %352, %353 : vector<16x128xf32>
    %355 = arith.mulf %27, %351 : vector<16x128xf32>
    %356 = arith.addf %354, %355 : vector<16x128xf32>
    %357 = arith.mulf %7, %343 : vector<16x128xf32>
    %358 = arith.mulf %19, %346 : vector<16x128xf32>
    %359 = arith.addf %357, %358 : vector<16x128xf32>
    %360 = arith.mulf %31, %351 : vector<16x128xf32>
    %361 = arith.addf %359, %360 : vector<16x128xf32>
    %362 = arith.mulf %11, %343 : vector<16x128xf32>
    %363 = arith.mulf %23, %346 : vector<16x128xf32>
    %364 = arith.addf %362, %363 : vector<16x128xf32>
    %365 = arith.mulf %35, %351 : vector<16x128xf32>
    %366 = arith.addf %364, %365 : vector<16x128xf32>
    %367 = arith.addf %361, %39 : vector<16x128xf32>
    %c1_i32_174 = arith.constant 1 : i32
    %368 = tpu.dynamic_rotate %356 by %c1_i32_174 dim 0 : vector<16x128xf32>, i32 -> vector<16x128xf32>
    %369 = arith.mulf %44, %368 : vector<16x128xf32>
    %370 = arith.addf %367, %369 : vector<16x128xf32>
    %c15_i32_175 = arith.constant 15 : i32
    %371 = tpu.dynamic_rotate %366 by %c15_i32_175 dim 0 : vector<16x128xf32>, i32 -> vector<16x128xf32>
    %372 = arith.mulf %48, %371 : vector<16x128xf32>
    %373 = arith.addf %370, %372 : vector<16x128xf32>
    %c0_176 = arith.constant 0 : index
    %374 = arith.index_cast %c6_i32 : i32 to index
    %c0_177 = arith.constant 0 : index
    %c0_178 = arith.constant 0 : index
    %375 = vector.load %arg5[%c0_176, %374, %c0_177, %c0_178] : memref<1x16x16x128xf32, #tpu.memory_space<vmem>>, vector<1x1x16x128xf32>
    %376 = vector.shape_cast %375 : vector<1x1x16x128xf32> to vector<16x128xf32>
    %377 = vector.shape_cast %373 : vector<16x128xf32> to vector<1x1x16x128xf32>
    tpu.vector_store %arg5[%c0_176, %374, %c0_177, %c0_178], %377 {strides = array<i32>} : memref<1x16x16x128xf32, #tpu.memory_space<vmem>>, vector<1x1x16x128xf32>,
    %c7_i32 = arith.constant 7 : i32
    %c1_i32_179 = arith.constant 1 : i32
    %378 = arith.subi %c7_i32, %c1_i32_179 : i32
    %c0_i32_180 = arith.constant 0 : i32
    %379 = arith.maxsi %378, %c0_i32_180 : i32
    %c1_i32_181 = arith.constant 1 : i32
    %380 = arith.addi %c7_i32, %c1_i32_181 : i32
    %c15_i32_182 = arith.constant 15 : i32
    %381 = arith.minsi %380, %c15_i32_182 : i32
    %c0_i32_183 = arith.constant 0 : i32
    %382 = arith.cmpi sgt, %c7_i32, %c0_i32_183 : i32
    %cst_184 = arith.constant 1.000000e+00 : f32
    %cst_185 = arith.constant 0.000000e+00 : f32
    %383 = arith.select %382, %cst_184, %cst_185 : f32
    %c15_i32_186 = arith.constant 15 : i32
    %384 = arith.cmpi slt, %c7_i32, %c15_i32_186 : i32
    %cst_187 = arith.constant 1.000000e+00 : f32
    %cst_188 = arith.constant 0.000000e+00 : f32
    %385 = arith.select %384, %cst_187, %cst_188 : f32
    %c0_189 = arith.constant 0 : index
    %386 = arith.index_cast %379 : i32 to index
    %c0_190 = arith.constant 0 : index
    %c0_191 = arith.constant 0 : index
    %387 = vector.load %arg2[%c0_189, %386, %c0_190, %c0_191] : memref<1x16x16x128xf32, #tpu.memory_space<vmem>>, vector<1x1x16x128xf32>
    %388 = vector.shape_cast %387 : vector<1x1x16x128xf32> to vector<16x128xf32>
    %389 = vector.broadcast %383 : f32 to vector<16x128xf32>
    %390 = arith.mulf %388, %389 : vector<16x128xf32>
    %c0_192 = arith.constant 0 : index
    %391 = arith.index_cast %c7_i32 : i32 to index
    %c0_193 = arith.constant 0 : index
    %c0_194 = arith.constant 0 : index
    %392 = vector.load %arg2[%c0_192, %391, %c0_193, %c0_194] : memref<1x16x16x128xf32, #tpu.memory_space<vmem>>, vector<1x1x16x128xf32>
    %393 = vector.shape_cast %392 : vector<1x1x16x128xf32> to vector<16x128xf32>
    %c0_195 = arith.constant 0 : index
    %394 = arith.index_cast %381 : i32 to index
    %c0_196 = arith.constant 0 : index
    %c0_197 = arith.constant 0 : index
    %395 = vector.load %arg2[%c0_195, %394, %c0_196, %c0_197] : memref<1x16x16x128xf32, #tpu.memory_space<vmem>>, vector<1x1x16x128xf32>
    %396 = vector.shape_cast %395 : vector<1x1x16x128xf32> to vector<16x128xf32>
    %397 = vector.broadcast %385 : f32 to vector<16x128xf32>
    %398 = arith.mulf %396, %397 : vector<16x128xf32>
    %399 = arith.mulf %3, %390 : vector<16x128xf32>
    %400 = arith.mulf %15, %393 : vector<16x128xf32>
    %401 = arith.addf %399, %400 : vector<16x128xf32>
    %402 = arith.mulf %27, %398 : vector<16x128xf32>
    %403 = arith.addf %401, %402 : vector<16x128xf32>
    %404 = arith.mulf %7, %390 : vector<16x128xf32>
    %405 = arith.mulf %19, %393 : vector<16x128xf32>
    %406 = arith.addf %404, %405 : vector<16x128xf32>
    %407 = arith.mulf %31, %398 : vector<16x128xf32>
    %408 = arith.addf %406, %407 : vector<16x128xf32>
    %409 = arith.mulf %11, %390 : vector<16x128xf32>
    %410 = arith.mulf %23, %393 : vector<16x128xf32>
    %411 = arith.addf %409, %410 : vector<16x128xf32>
    %412 = arith.mulf %35, %398 : vector<16x128xf32>
    %413 = arith.addf %411, %412 : vector<16x128xf32>
    %414 = arith.addf %408, %39 : vector<16x128xf32>
    %c1_i32_198 = arith.constant 1 : i32
    %415 = tpu.dynamic_rotate %403 by %c1_i32_198 dim 0 : vector<16x128xf32>, i32 -> vector<16x128xf32>
    %416 = arith.mulf %44, %415 : vector<16x128xf32>
    %417 = arith.addf %414, %416 : vector<16x128xf32>
    %c15_i32_199 = arith.constant 15 : i32
    %418 = tpu.dynamic_rotate %413 by %c15_i32_199 dim 0 : vector<16x128xf32>, i32 -> vector<16x128xf32>
    %419 = arith.mulf %48, %418 : vector<16x128xf32>
    %420 = arith.addf %417, %419 : vector<16x128xf32>
    %c0_200 = arith.constant 0 : index
    %421 = arith.index_cast %c7_i32 : i32 to index
    %c0_201 = arith.constant 0 : index
    %c0_202 = arith.constant 0 : index
    %422 = vector.load %arg5[%c0_200, %421, %c0_201, %c0_202] : memref<1x16x16x128xf32, #tpu.memory_space<vmem>>, vector<1x1x16x128xf32>
    %423 = vector.shape_cast %422 : vector<1x1x16x128xf32> to vector<16x128xf32>
    %424 = vector.shape_cast %420 : vector<16x128xf32> to vector<1x1x16x128xf32>
    tpu.vector_store %arg5[%c0_200, %421, %c0_201, %c0_202], %424 {strides = array<i32>} : memref<1x16x16x128xf32, #tpu.memory_space<vmem>>, vector<1x1x16x128xf32>,
    %c8_i32 = arith.constant 8 : i32
    %c1_i32_203 = arith.constant 1 : i32
    %425 = arith.subi %c8_i32, %c1_i32_203 : i32
    %c0_i32_204 = arith.constant 0 : i32
    %426 = arith.maxsi %425, %c0_i32_204 : i32
    %c1_i32_205 = arith.constant 1 : i32
    %427 = arith.addi %c8_i32, %c1_i32_205 : i32
    %c15_i32_206 = arith.constant 15 : i32
    %428 = arith.minsi %427, %c15_i32_206 : i32
    %c0_i32_207 = arith.constant 0 : i32
    %429 = arith.cmpi sgt, %c8_i32, %c0_i32_207 : i32
    %cst_208 = arith.constant 1.000000e+00 : f32
    %cst_209 = arith.constant 0.000000e+00 : f32
    %430 = arith.select %429, %cst_208, %cst_209 : f32
    %c15_i32_210 = arith.constant 15 : i32
    %431 = arith.cmpi slt, %c8_i32, %c15_i32_210 : i32
    %cst_211 = arith.constant 1.000000e+00 : f32
    %cst_212 = arith.constant 0.000000e+00 : f32
    %432 = arith.select %431, %cst_211, %cst_212 : f32
    %c0_213 = arith.constant 0 : index
    %433 = arith.index_cast %426 : i32 to index
    %c0_214 = arith.constant 0 : index
    %c0_215 = arith.constant 0 : index
    %434 = vector.load %arg2[%c0_213, %433, %c0_214, %c0_215] : memref<1x16x16x128xf32, #tpu.memory_space<vmem>>, vector<1x1x16x128xf32>
    %435 = vector.shape_cast %434 : vector<1x1x16x128xf32> to vector<16x128xf32>
    %436 = vector.broadcast %430 : f32 to vector<16x128xf32>
    %437 = arith.mulf %435, %436 : vector<16x128xf32>
    %c0_216 = arith.constant 0 : index
    %438 = arith.index_cast %c8_i32 : i32 to index
    %c0_217 = arith.constant 0 : index
    %c0_218 = arith.constant 0 : index
    %439 = vector.load %arg2[%c0_216, %438, %c0_217, %c0_218] : memref<1x16x16x128xf32, #tpu.memory_space<vmem>>, vector<1x1x16x128xf32>
    %440 = vector.shape_cast %439 : vector<1x1x16x128xf32> to vector<16x128xf32>
    %c0_219 = arith.constant 0 : index
    %441 = arith.index_cast %428 : i32 to index
    %c0_220 = arith.constant 0 : index
    %c0_221 = arith.constant 0 : index
    %442 = vector.load %arg2[%c0_219, %441, %c0_220, %c0_221] : memref<1x16x16x128xf32, #tpu.memory_space<vmem>>, vector<1x1x16x128xf32>
    %443 = vector.shape_cast %442 : vector<1x1x16x128xf32> to vector<16x128xf32>
    %444 = vector.broadcast %432 : f32 to vector<16x128xf32>
    %445 = arith.mulf %443, %444 : vector<16x128xf32>
    %446 = arith.mulf %3, %437 : vector<16x128xf32>
    %447 = arith.mulf %15, %440 : vector<16x128xf32>
    %448 = arith.addf %446, %447 : vector<16x128xf32>
    %449 = arith.mulf %27, %445 : vector<16x128xf32>
    %450 = arith.addf %448, %449 : vector<16x128xf32>
    %451 = arith.mulf %7, %437 : vector<16x128xf32>
    %452 = arith.mulf %19, %440 : vector<16x128xf32>
    %453 = arith.addf %451, %452 : vector<16x128xf32>
    %454 = arith.mulf %31, %445 : vector<16x128xf32>
    %455 = arith.addf %453, %454 : vector<16x128xf32>
    %456 = arith.mulf %11, %437 : vector<16x128xf32>
    %457 = arith.mulf %23, %440 : vector<16x128xf32>
    %458 = arith.addf %456, %457 : vector<16x128xf32>
    %459 = arith.mulf %35, %445 : vector<16x128xf32>
    %460 = arith.addf %458, %459 : vector<16x128xf32>
    %461 = arith.addf %455, %39 : vector<16x128xf32>
    %c1_i32_222 = arith.constant 1 : i32
    %462 = tpu.dynamic_rotate %450 by %c1_i32_222 dim 0 : vector<16x128xf32>, i32 -> vector<16x128xf32>
    %463 = arith.mulf %44, %462 : vector<16x128xf32>
    %464 = arith.addf %461, %463 : vector<16x128xf32>
    %c15_i32_223 = arith.constant 15 : i32
    %465 = tpu.dynamic_rotate %460 by %c15_i32_223 dim 0 : vector<16x128xf32>, i32 -> vector<16x128xf32>
    %466 = arith.mulf %48, %465 : vector<16x128xf32>
    %467 = arith.addf %464, %466 : vector<16x128xf32>
    %c0_224 = arith.constant 0 : index
    %468 = arith.index_cast %c8_i32 : i32 to index
    %c0_225 = arith.constant 0 : index
    %c0_226 = arith.constant 0 : index
    %469 = vector.load %arg5[%c0_224, %468, %c0_225, %c0_226] : memref<1x16x16x128xf32, #tpu.memory_space<vmem>>, vector<1x1x16x128xf32>
    %470 = vector.shape_cast %469 : vector<1x1x16x128xf32> to vector<16x128xf32>
    %471 = vector.shape_cast %467 : vector<16x128xf32> to vector<1x1x16x128xf32>
    tpu.vector_store %arg5[%c0_224, %468, %c0_225, %c0_226], %471 {strides = array<i32>} : memref<1x16x16x128xf32, #tpu.memory_space<vmem>>, vector<1x1x16x128xf32>,
    %c9_i32 = arith.constant 9 : i32
    %c1_i32_227 = arith.constant 1 : i32
    %472 = arith.subi %c9_i32, %c1_i32_227 : i32
    %c0_i32_228 = arith.constant 0 : i32
    %473 = arith.maxsi %472, %c0_i32_228 : i32
    %c1_i32_229 = arith.constant 1 : i32
    %474 = arith.addi %c9_i32, %c1_i32_229 : i32
    %c15_i32_230 = arith.constant 15 : i32
    %475 = arith.minsi %474, %c15_i32_230 : i32
    %c0_i32_231 = arith.constant 0 : i32
    %476 = arith.cmpi sgt, %c9_i32, %c0_i32_231 : i32
    %cst_232 = arith.constant 1.000000e+00 : f32
    %cst_233 = arith.constant 0.000000e+00 : f32
    %477 = arith.select %476, %cst_232, %cst_233 : f32
    %c15_i32_234 = arith.constant 15 : i32
    %478 = arith.cmpi slt, %c9_i32, %c15_i32_234 : i32
    %cst_235 = arith.constant 1.000000e+00 : f32
    %cst_236 = arith.constant 0.000000e+00 : f32
    %479 = arith.select %478, %cst_235, %cst_236 : f32
    %c0_237 = arith.constant 0 : index
    %480 = arith.index_cast %473 : i32 to index
    %c0_238 = arith.constant 0 : index
    %c0_239 = arith.constant 0 : index
    %481 = vector.load %arg2[%c0_237, %480, %c0_238, %c0_239] : memref<1x16x16x128xf32, #tpu.memory_space<vmem>>, vector<1x1x16x128xf32>
    %482 = vector.shape_cast %481 : vector<1x1x16x128xf32> to vector<16x128xf32>
    %483 = vector.broadcast %477 : f32 to vector<16x128xf32>
    %484 = arith.mulf %482, %483 : vector<16x128xf32>
    %c0_240 = arith.constant 0 : index
    %485 = arith.index_cast %c9_i32 : i32 to index
    %c0_241 = arith.constant 0 : index
    %c0_242 = arith.constant 0 : index
    %486 = vector.load %arg2[%c0_240, %485, %c0_241, %c0_242] : memref<1x16x16x128xf32, #tpu.memory_space<vmem>>, vector<1x1x16x128xf32>
    %487 = vector.shape_cast %486 : vector<1x1x16x128xf32> to vector<16x128xf32>
    %c0_243 = arith.constant 0 : index
    %488 = arith.index_cast %475 : i32 to index
    %c0_244 = arith.constant 0 : index
    %c0_245 = arith.constant 0 : index
    %489 = vector.load %arg2[%c0_243, %488, %c0_244, %c0_245] : memref<1x16x16x128xf32, #tpu.memory_space<vmem>>, vector<1x1x16x128xf32>
    %490 = vector.shape_cast %489 : vector<1x1x16x128xf32> to vector<16x128xf32>
    %491 = vector.broadcast %479 : f32 to vector<16x128xf32>
    %492 = arith.mulf %490, %491 : vector<16x128xf32>
    %493 = arith.mulf %3, %484 : vector<16x128xf32>
    %494 = arith.mulf %15, %487 : vector<16x128xf32>
    %495 = arith.addf %493, %494 : vector<16x128xf32>
    %496 = arith.mulf %27, %492 : vector<16x128xf32>
    %497 = arith.addf %495, %496 : vector<16x128xf32>
    %498 = arith.mulf %7, %484 : vector<16x128xf32>
    %499 = arith.mulf %19, %487 : vector<16x128xf32>
    %500 = arith.addf %498, %499 : vector<16x128xf32>
    %501 = arith.mulf %31, %492 : vector<16x128xf32>
    %502 = arith.addf %500, %501 : vector<16x128xf32>
    %503 = arith.mulf %11, %484 : vector<16x128xf32>
    %504 = arith.mulf %23, %487 : vector<16x128xf32>
    %505 = arith.addf %503, %504 : vector<16x128xf32>
    %506 = arith.mulf %35, %492 : vector<16x128xf32>
    %507 = arith.addf %505, %506 : vector<16x128xf32>
    %508 = arith.addf %502, %39 : vector<16x128xf32>
    %c1_i32_246 = arith.constant 1 : i32
    %509 = tpu.dynamic_rotate %497 by %c1_i32_246 dim 0 : vector<16x128xf32>, i32 -> vector<16x128xf32>
    %510 = arith.mulf %44, %509 : vector<16x128xf32>
    %511 = arith.addf %508, %510 : vector<16x128xf32>
    %c15_i32_247 = arith.constant 15 : i32
    %512 = tpu.dynamic_rotate %507 by %c15_i32_247 dim 0 : vector<16x128xf32>, i32 -> vector<16x128xf32>
    %513 = arith.mulf %48, %512 : vector<16x128xf32>
    %514 = arith.addf %511, %513 : vector<16x128xf32>
    %c0_248 = arith.constant 0 : index
    %515 = arith.index_cast %c9_i32 : i32 to index
    %c0_249 = arith.constant 0 : index
    %c0_250 = arith.constant 0 : index
    %516 = vector.load %arg5[%c0_248, %515, %c0_249, %c0_250] : memref<1x16x16x128xf32, #tpu.memory_space<vmem>>, vector<1x1x16x128xf32>
    %517 = vector.shape_cast %516 : vector<1x1x16x128xf32> to vector<16x128xf32>
    %518 = vector.shape_cast %514 : vector<16x128xf32> to vector<1x1x16x128xf32>
    tpu.vector_store %arg5[%c0_248, %515, %c0_249, %c0_250], %518 {strides = array<i32>} : memref<1x16x16x128xf32, #tpu.memory_space<vmem>>, vector<1x1x16x128xf32>,
    %c10_i32 = arith.constant 10 : i32
    %c1_i32_251 = arith.constant 1 : i32
    %519 = arith.subi %c10_i32, %c1_i32_251 : i32
    %c0_i32_252 = arith.constant 0 : i32
    %520 = arith.maxsi %519, %c0_i32_252 : i32
    %c1_i32_253 = arith.constant 1 : i32
    %521 = arith.addi %c10_i32, %c1_i32_253 : i32
    %c15_i32_254 = arith.constant 15 : i32
    %522 = arith.minsi %521, %c15_i32_254 : i32
    %c0_i32_255 = arith.constant 0 : i32
    %523 = arith.cmpi sgt, %c10_i32, %c0_i32_255 : i32
    %cst_256 = arith.constant 1.000000e+00 : f32
    %cst_257 = arith.constant 0.000000e+00 : f32
    %524 = arith.select %523, %cst_256, %cst_257 : f32
    %c15_i32_258 = arith.constant 15 : i32
    %525 = arith.cmpi slt, %c10_i32, %c15_i32_258 : i32
    %cst_259 = arith.constant 1.000000e+00 : f32
    %cst_260 = arith.constant 0.000000e+00 : f32
    %526 = arith.select %525, %cst_259, %cst_260 : f32
    %c0_261 = arith.constant 0 : index
    %527 = arith.index_cast %520 : i32 to index
    %c0_262 = arith.constant 0 : index
    %c0_263 = arith.constant 0 : index
    %528 = vector.load %arg2[%c0_261, %527, %c0_262, %c0_263] : memref<1x16x16x128xf32, #tpu.memory_space<vmem>>, vector<1x1x16x128xf32>
    %529 = vector.shape_cast %528 : vector<1x1x16x128xf32> to vector<16x128xf32>
    %530 = vector.broadcast %524 : f32 to vector<16x128xf32>
    %531 = arith.mulf %529, %530 : vector<16x128xf32>
    %c0_264 = arith.constant 0 : index
    %532 = arith.index_cast %c10_i32 : i32 to index
    %c0_265 = arith.constant 0 : index
    %c0_266 = arith.constant 0 : index
    %533 = vector.load %arg2[%c0_264, %532, %c0_265, %c0_266] : memref<1x16x16x128xf32, #tpu.memory_space<vmem>>, vector<1x1x16x128xf32>
    %534 = vector.shape_cast %533 : vector<1x1x16x128xf32> to vector<16x128xf32>
    %c0_267 = arith.constant 0 : index
    %535 = arith.index_cast %522 : i32 to index
    %c0_268 = arith.constant 0 : index
    %c0_269 = arith.constant 0 : index
    %536 = vector.load %arg2[%c0_267, %535, %c0_268, %c0_269] : memref<1x16x16x128xf32, #tpu.memory_space<vmem>>, vector<1x1x16x128xf32>
    %537 = vector.shape_cast %536 : vector<1x1x16x128xf32> to vector<16x128xf32>
    %538 = vector.broadcast %526 : f32 to vector<16x128xf32>
    %539 = arith.mulf %537, %538 : vector<16x128xf32>
    %540 = arith.mulf %3, %531 : vector<16x128xf32>
    %541 = arith.mulf %15, %534 : vector<16x128xf32>
    %542 = arith.addf %540, %541 : vector<16x128xf32>
    %543 = arith.mulf %27, %539 : vector<16x128xf32>
    %544 = arith.addf %542, %543 : vector<16x128xf32>
    %545 = arith.mulf %7, %531 : vector<16x128xf32>
    %546 = arith.mulf %19, %534 : vector<16x128xf32>
    %547 = arith.addf %545, %546 : vector<16x128xf32>
    %548 = arith.mulf %31, %539 : vector<16x128xf32>
    %549 = arith.addf %547, %548 : vector<16x128xf32>
    %550 = arith.mulf %11, %531 : vector<16x128xf32>
    %551 = arith.mulf %23, %534 : vector<16x128xf32>
    %552 = arith.addf %550, %551 : vector<16x128xf32>
    %553 = arith.mulf %35, %539 : vector<16x128xf32>
    %554 = arith.addf %552, %553 : vector<16x128xf32>
    %555 = arith.addf %549, %39 : vector<16x128xf32>
    %c1_i32_270 = arith.constant 1 : i32
    %556 = tpu.dynamic_rotate %544 by %c1_i32_270 dim 0 : vector<16x128xf32>, i32 -> vector<16x128xf32>
    %557 = arith.mulf %44, %556 : vector<16x128xf32>
    %558 = arith.addf %555, %557 : vector<16x128xf32>
    %c15_i32_271 = arith.constant 15 : i32
    %559 = tpu.dynamic_rotate %554 by %c15_i32_271 dim 0 : vector<16x128xf32>, i32 -> vector<16x128xf32>
    %560 = arith.mulf %48, %559 : vector<16x128xf32>
    %561 = arith.addf %558, %560 : vector<16x128xf32>
    %c0_272 = arith.constant 0 : index
    %562 = arith.index_cast %c10_i32 : i32 to index
    %c0_273 = arith.constant 0 : index
    %c0_274 = arith.constant 0 : index
    %563 = vector.load %arg5[%c0_272, %562, %c0_273, %c0_274] : memref<1x16x16x128xf32, #tpu.memory_space<vmem>>, vector<1x1x16x128xf32>
    %564 = vector.shape_cast %563 : vector<1x1x16x128xf32> to vector<16x128xf32>
    %565 = vector.shape_cast %561 : vector<16x128xf32> to vector<1x1x16x128xf32>
    tpu.vector_store %arg5[%c0_272, %562, %c0_273, %c0_274], %565 {strides = array<i32>} : memref<1x16x16x128xf32, #tpu.memory_space<vmem>>, vector<1x1x16x128xf32>,
    %c11_i32 = arith.constant 11 : i32
    %c1_i32_275 = arith.constant 1 : i32
    %566 = arith.subi %c11_i32, %c1_i32_275 : i32
    %c0_i32_276 = arith.constant 0 : i32
    %567 = arith.maxsi %566, %c0_i32_276 : i32
    %c1_i32_277 = arith.constant 1 : i32
    %568 = arith.addi %c11_i32, %c1_i32_277 : i32
    %c15_i32_278 = arith.constant 15 : i32
    %569 = arith.minsi %568, %c15_i32_278 : i32
    %c0_i32_279 = arith.constant 0 : i32
    %570 = arith.cmpi sgt, %c11_i32, %c0_i32_279 : i32
    %cst_280 = arith.constant 1.000000e+00 : f32
    %cst_281 = arith.constant 0.000000e+00 : f32
    %571 = arith.select %570, %cst_280, %cst_281 : f32
    %c15_i32_282 = arith.constant 15 : i32
    %572 = arith.cmpi slt, %c11_i32, %c15_i32_282 : i32
    %cst_283 = arith.constant 1.000000e+00 : f32
    %cst_284 = arith.constant 0.000000e+00 : f32
    %573 = arith.select %572, %cst_283, %cst_284 : f32
    %c0_285 = arith.constant 0 : index
    %574 = arith.index_cast %567 : i32 to index
    %c0_286 = arith.constant 0 : index
    %c0_287 = arith.constant 0 : index
    %575 = vector.load %arg2[%c0_285, %574, %c0_286, %c0_287] : memref<1x16x16x128xf32, #tpu.memory_space<vmem>>, vector<1x1x16x128xf32>
    %576 = vector.shape_cast %575 : vector<1x1x16x128xf32> to vector<16x128xf32>
    %577 = vector.broadcast %571 : f32 to vector<16x128xf32>
    %578 = arith.mulf %576, %577 : vector<16x128xf32>
    %c0_288 = arith.constant 0 : index
    %579 = arith.index_cast %c11_i32 : i32 to index
    %c0_289 = arith.constant 0 : index
    %c0_290 = arith.constant 0 : index
    %580 = vector.load %arg2[%c0_288, %579, %c0_289, %c0_290] : memref<1x16x16x128xf32, #tpu.memory_space<vmem>>, vector<1x1x16x128xf32>
    %581 = vector.shape_cast %580 : vector<1x1x16x128xf32> to vector<16x128xf32>
    %c0_291 = arith.constant 0 : index
    %582 = arith.index_cast %569 : i32 to index
    %c0_292 = arith.constant 0 : index
    %c0_293 = arith.constant 0 : index
    %583 = vector.load %arg2[%c0_291, %582, %c0_292, %c0_293] : memref<1x16x16x128xf32, #tpu.memory_space<vmem>>, vector<1x1x16x128xf32>
    %584 = vector.shape_cast %583 : vector<1x1x16x128xf32> to vector<16x128xf32>
    %585 = vector.broadcast %573 : f32 to vector<16x128xf32>
    %586 = arith.mulf %584, %585 : vector<16x128xf32>
    %587 = arith.mulf %3, %578 : vector<16x128xf32>
    %588 = arith.mulf %15, %581 : vector<16x128xf32>
    %589 = arith.addf %587, %588 : vector<16x128xf32>
    %590 = arith.mulf %27, %586 : vector<16x128xf32>
    %591 = arith.addf %589, %590 : vector<16x128xf32>
    %592 = arith.mulf %7, %578 : vector<16x128xf32>
    %593 = arith.mulf %19, %581 : vector<16x128xf32>
    %594 = arith.addf %592, %593 : vector<16x128xf32>
    %595 = arith.mulf %31, %586 : vector<16x128xf32>
    %596 = arith.addf %594, %595 : vector<16x128xf32>
    %597 = arith.mulf %11, %578 : vector<16x128xf32>
    %598 = arith.mulf %23, %581 : vector<16x128xf32>
    %599 = arith.addf %597, %598 : vector<16x128xf32>
    %600 = arith.mulf %35, %586 : vector<16x128xf32>
    %601 = arith.addf %599, %600 : vector<16x128xf32>
    %602 = arith.addf %596, %39 : vector<16x128xf32>
    %c1_i32_294 = arith.constant 1 : i32
    %603 = tpu.dynamic_rotate %591 by %c1_i32_294 dim 0 : vector<16x128xf32>, i32 -> vector<16x128xf32>
    %604 = arith.mulf %44, %603 : vector<16x128xf32>
    %605 = arith.addf %602, %604 : vector<16x128xf32>
    %c15_i32_295 = arith.constant 15 : i32
    %606 = tpu.dynamic_rotate %601 by %c15_i32_295 dim 0 : vector<16x128xf32>, i32 -> vector<16x128xf32>
    %607 = arith.mulf %48, %606 : vector<16x128xf32>
    %608 = arith.addf %605, %607 : vector<16x128xf32>
    %c0_296 = arith.constant 0 : index
    %609 = arith.index_cast %c11_i32 : i32 to index
    %c0_297 = arith.constant 0 : index
    %c0_298 = arith.constant 0 : index
    %610 = vector.load %arg5[%c0_296, %609, %c0_297, %c0_298] : memref<1x16x16x128xf32, #tpu.memory_space<vmem>>, vector<1x1x16x128xf32>
    %611 = vector.shape_cast %610 : vector<1x1x16x128xf32> to vector<16x128xf32>
    %612 = vector.shape_cast %608 : vector<16x128xf32> to vector<1x1x16x128xf32>
    tpu.vector_store %arg5[%c0_296, %609, %c0_297, %c0_298], %612 {strides = array<i32>} : memref<1x16x16x128xf32, #tpu.memory_space<vmem>>, vector<1x1x16x128xf32>,
    %c12_i32 = arith.constant 12 : i32
    %c1_i32_299 = arith.constant 1 : i32
    %613 = arith.subi %c12_i32, %c1_i32_299 : i32
    %c0_i32_300 = arith.constant 0 : i32
    %614 = arith.maxsi %613, %c0_i32_300 : i32
    %c1_i32_301 = arith.constant 1 : i32
    %615 = arith.addi %c12_i32, %c1_i32_301 : i32
    %c15_i32_302 = arith.constant 15 : i32
    %616 = arith.minsi %615, %c15_i32_302 : i32
    %c0_i32_303 = arith.constant 0 : i32
    %617 = arith.cmpi sgt, %c12_i32, %c0_i32_303 : i32
    %cst_304 = arith.constant 1.000000e+00 : f32
    %cst_305 = arith.constant 0.000000e+00 : f32
    %618 = arith.select %617, %cst_304, %cst_305 : f32
    %c15_i32_306 = arith.constant 15 : i32
    %619 = arith.cmpi slt, %c12_i32, %c15_i32_306 : i32
    %cst_307 = arith.constant 1.000000e+00 : f32
    %cst_308 = arith.constant 0.000000e+00 : f32
    %620 = arith.select %619, %cst_307, %cst_308 : f32
    %c0_309 = arith.constant 0 : index
    %621 = arith.index_cast %614 : i32 to index
    %c0_310 = arith.constant 0 : index
    %c0_311 = arith.constant 0 : index
    %622 = vector.load %arg2[%c0_309, %621, %c0_310, %c0_311] : memref<1x16x16x128xf32, #tpu.memory_space<vmem>>, vector<1x1x16x128xf32>
    %623 = vector.shape_cast %622 : vector<1x1x16x128xf32> to vector<16x128xf32>
    %624 = vector.broadcast %618 : f32 to vector<16x128xf32>
    %625 = arith.mulf %623, %624 : vector<16x128xf32>
    %c0_312 = arith.constant 0 : index
    %626 = arith.index_cast %c12_i32 : i32 to index
    %c0_313 = arith.constant 0 : index
    %c0_314 = arith.constant 0 : index
    %627 = vector.load %arg2[%c0_312, %626, %c0_313, %c0_314] : memref<1x16x16x128xf32, #tpu.memory_space<vmem>>, vector<1x1x16x128xf32>
    %628 = vector.shape_cast %627 : vector<1x1x16x128xf32> to vector<16x128xf32>
    %c0_315 = arith.constant 0 : index
    %629 = arith.index_cast %616 : i32 to index
    %c0_316 = arith.constant 0 : index
    %c0_317 = arith.constant 0 : index
    %630 = vector.load %arg2[%c0_315, %629, %c0_316, %c0_317] : memref<1x16x16x128xf32, #tpu.memory_space<vmem>>, vector<1x1x16x128xf32>
    %631 = vector.shape_cast %630 : vector<1x1x16x128xf32> to vector<16x128xf32>
    %632 = vector.broadcast %620 : f32 to vector<16x128xf32>
    %633 = arith.mulf %631, %632 : vector<16x128xf32>
    %634 = arith.mulf %3, %625 : vector<16x128xf32>
    %635 = arith.mulf %15, %628 : vector<16x128xf32>
    %636 = arith.addf %634, %635 : vector<16x128xf32>
    %637 = arith.mulf %27, %633 : vector<16x128xf32>
    %638 = arith.addf %636, %637 : vector<16x128xf32>
    %639 = arith.mulf %7, %625 : vector<16x128xf32>
    %640 = arith.mulf %19, %628 : vector<16x128xf32>
    %641 = arith.addf %639, %640 : vector<16x128xf32>
    %642 = arith.mulf %31, %633 : vector<16x128xf32>
    %643 = arith.addf %641, %642 : vector<16x128xf32>
    %644 = arith.mulf %11, %625 : vector<16x128xf32>
    %645 = arith.mulf %23, %628 : vector<16x128xf32>
    %646 = arith.addf %644, %645 : vector<16x128xf32>
    %647 = arith.mulf %35, %633 : vector<16x128xf32>
    %648 = arith.addf %646, %647 : vector<16x128xf32>
    %649 = arith.addf %643, %39 : vector<16x128xf32>
    %c1_i32_318 = arith.constant 1 : i32
    %650 = tpu.dynamic_rotate %638 by %c1_i32_318 dim 0 : vector<16x128xf32>, i32 -> vector<16x128xf32>
    %651 = arith.mulf %44, %650 : vector<16x128xf32>
    %652 = arith.addf %649, %651 : vector<16x128xf32>
    %c15_i32_319 = arith.constant 15 : i32
    %653 = tpu.dynamic_rotate %648 by %c15_i32_319 dim 0 : vector<16x128xf32>, i32 -> vector<16x128xf32>
    %654 = arith.mulf %48, %653 : vector<16x128xf32>
    %655 = arith.addf %652, %654 : vector<16x128xf32>
    %c0_320 = arith.constant 0 : index
    %656 = arith.index_cast %c12_i32 : i32 to index
    %c0_321 = arith.constant 0 : index
    %c0_322 = arith.constant 0 : index
    %657 = vector.load %arg5[%c0_320, %656, %c0_321, %c0_322] : memref<1x16x16x128xf32, #tpu.memory_space<vmem>>, vector<1x1x16x128xf32>
    %658 = vector.shape_cast %657 : vector<1x1x16x128xf32> to vector<16x128xf32>
    %659 = vector.shape_cast %655 : vector<16x128xf32> to vector<1x1x16x128xf32>
    tpu.vector_store %arg5[%c0_320, %656, %c0_321, %c0_322], %659 {strides = array<i32>} : memref<1x16x16x128xf32, #tpu.memory_space<vmem>>, vector<1x1x16x128xf32>,
    %c13_i32 = arith.constant 13 : i32
    %c1_i32_323 = arith.constant 1 : i32
    %660 = arith.subi %c13_i32, %c1_i32_323 : i32
    %c0_i32_324 = arith.constant 0 : i32
    %661 = arith.maxsi %660, %c0_i32_324 : i32
    %c1_i32_325 = arith.constant 1 : i32
    %662 = arith.addi %c13_i32, %c1_i32_325 : i32
    %c15_i32_326 = arith.constant 15 : i32
    %663 = arith.minsi %662, %c15_i32_326 : i32
    %c0_i32_327 = arith.constant 0 : i32
    %664 = arith.cmpi sgt, %c13_i32, %c0_i32_327 : i32
    %cst_328 = arith.constant 1.000000e+00 : f32
    %cst_329 = arith.constant 0.000000e+00 : f32
    %665 = arith.select %664, %cst_328, %cst_329 : f32
    %c15_i32_330 = arith.constant 15 : i32
    %666 = arith.cmpi slt, %c13_i32, %c15_i32_330 : i32
    %cst_331 = arith.constant 1.000000e+00 : f32
    %cst_332 = arith.constant 0.000000e+00 : f32
    %667 = arith.select %666, %cst_331, %cst_332 : f32
    %c0_333 = arith.constant 0 : index
    %668 = arith.index_cast %661 : i32 to index
    %c0_334 = arith.constant 0 : index
    %c0_335 = arith.constant 0 : index
    %669 = vector.load %arg2[%c0_333, %668, %c0_334, %c0_335] : memref<1x16x16x128xf32, #tpu.memory_space<vmem>>, vector<1x1x16x128xf32>
    %670 = vector.shape_cast %669 : vector<1x1x16x128xf32> to vector<16x128xf32>
    %671 = vector.broadcast %665 : f32 to vector<16x128xf32>
    %672 = arith.mulf %670, %671 : vector<16x128xf32>
    %c0_336 = arith.constant 0 : index
    %673 = arith.index_cast %c13_i32 : i32 to index
    %c0_337 = arith.constant 0 : index
    %c0_338 = arith.constant 0 : index
    %674 = vector.load %arg2[%c0_336, %673, %c0_337, %c0_338] : memref<1x16x16x128xf32, #tpu.memory_space<vmem>>, vector<1x1x16x128xf32>
    %675 = vector.shape_cast %674 : vector<1x1x16x128xf32> to vector<16x128xf32>
    %c0_339 = arith.constant 0 : index
    %676 = arith.index_cast %663 : i32 to index
    %c0_340 = arith.constant 0 : index
    %c0_341 = arith.constant 0 : index
    %677 = vector.load %arg2[%c0_339, %676, %c0_340, %c0_341] : memref<1x16x16x128xf32, #tpu.memory_space<vmem>>, vector<1x1x16x128xf32>
    %678 = vector.shape_cast %677 : vector<1x1x16x128xf32> to vector<16x128xf32>
    %679 = vector.broadcast %667 : f32 to vector<16x128xf32>
    %680 = arith.mulf %678, %679 : vector<16x128xf32>
    %681 = arith.mulf %3, %672 : vector<16x128xf32>
    %682 = arith.mulf %15, %675 : vector<16x128xf32>
    %683 = arith.addf %681, %682 : vector<16x128xf32>
    %684 = arith.mulf %27, %680 : vector<16x128xf32>
    %685 = arith.addf %683, %684 : vector<16x128xf32>
    %686 = arith.mulf %7, %672 : vector<16x128xf32>
    %687 = arith.mulf %19, %675 : vector<16x128xf32>
    %688 = arith.addf %686, %687 : vector<16x128xf32>
    %689 = arith.mulf %31, %680 : vector<16x128xf32>
    %690 = arith.addf %688, %689 : vector<16x128xf32>
    %691 = arith.mulf %11, %672 : vector<16x128xf32>
    %692 = arith.mulf %23, %675 : vector<16x128xf32>
    %693 = arith.addf %691, %692 : vector<16x128xf32>
    %694 = arith.mulf %35, %680 : vector<16x128xf32>
    %695 = arith.addf %693, %694 : vector<16x128xf32>
    %696 = arith.addf %690, %39 : vector<16x128xf32>
    %c1_i32_342 = arith.constant 1 : i32
    %697 = tpu.dynamic_rotate %685 by %c1_i32_342 dim 0 : vector<16x128xf32>, i32 -> vector<16x128xf32>
    %698 = arith.mulf %44, %697 : vector<16x128xf32>
    %699 = arith.addf %696, %698 : vector<16x128xf32>
    %c15_i32_343 = arith.constant 15 : i32
    %700 = tpu.dynamic_rotate %695 by %c15_i32_343 dim 0 : vector<16x128xf32>, i32 -> vector<16x128xf32>
    %701 = arith.mulf %48, %700 : vector<16x128xf32>
    %702 = arith.addf %699, %701 : vector<16x128xf32>
    %c0_344 = arith.constant 0 : index
    %703 = arith.index_cast %c13_i32 : i32 to index
    %c0_345 = arith.constant 0 : index
    %c0_346 = arith.constant 0 : index
    %704 = vector.load %arg5[%c0_344, %703, %c0_345, %c0_346] : memref<1x16x16x128xf32, #tpu.memory_space<vmem>>, vector<1x1x16x128xf32>
    %705 = vector.shape_cast %704 : vector<1x1x16x128xf32> to vector<16x128xf32>
    %706 = vector.shape_cast %702 : vector<16x128xf32> to vector<1x1x16x128xf32>
    tpu.vector_store %arg5[%c0_344, %703, %c0_345, %c0_346], %706 {strides = array<i32>} : memref<1x16x16x128xf32, #tpu.memory_space<vmem>>, vector<1x1x16x128xf32>,
    %c14_i32 = arith.constant 14 : i32
    %c1_i32_347 = arith.constant 1 : i32
    %707 = arith.subi %c14_i32, %c1_i32_347 : i32
    %c0_i32_348 = arith.constant 0 : i32
    %708 = arith.maxsi %707, %c0_i32_348 : i32
    %c1_i32_349 = arith.constant 1 : i32
    %709 = arith.addi %c14_i32, %c1_i32_349 : i32
    %c15_i32_350 = arith.constant 15 : i32
    %710 = arith.minsi %709, %c15_i32_350 : i32
    %c0_i32_351 = arith.constant 0 : i32
    %711 = arith.cmpi sgt, %c14_i32, %c0_i32_351 : i32
    %cst_352 = arith.constant 1.000000e+00 : f32
    %cst_353 = arith.constant 0.000000e+00 : f32
    %712 = arith.select %711, %cst_352, %cst_353 : f32
    %c15_i32_354 = arith.constant 15 : i32
    %713 = arith.cmpi slt, %c14_i32, %c15_i32_354 : i32
    %cst_355 = arith.constant 1.000000e+00 : f32
    %cst_356 = arith.constant 0.000000e+00 : f32
    %714 = arith.select %713, %cst_355, %cst_356 : f32
    %c0_357 = arith.constant 0 : index
    %715 = arith.index_cast %708 : i32 to index
    %c0_358 = arith.constant 0 : index
    %c0_359 = arith.constant 0 : index
    %716 = vector.load %arg2[%c0_357, %715, %c0_358, %c0_359] : memref<1x16x16x128xf32, #tpu.memory_space<vmem>>, vector<1x1x16x128xf32>
    %717 = vector.shape_cast %716 : vector<1x1x16x128xf32> to vector<16x128xf32>
    %718 = vector.broadcast %712 : f32 to vector<16x128xf32>
    %719 = arith.mulf %717, %718 : vector<16x128xf32>
    %c0_360 = arith.constant 0 : index
    %720 = arith.index_cast %c14_i32 : i32 to index
    %c0_361 = arith.constant 0 : index
    %c0_362 = arith.constant 0 : index
    %721 = vector.load %arg2[%c0_360, %720, %c0_361, %c0_362] : memref<1x16x16x128xf32, #tpu.memory_space<vmem>>, vector<1x1x16x128xf32>
    %722 = vector.shape_cast %721 : vector<1x1x16x128xf32> to vector<16x128xf32>
    %c0_363 = arith.constant 0 : index
    %723 = arith.index_cast %710 : i32 to index
    %c0_364 = arith.constant 0 : index
    %c0_365 = arith.constant 0 : index
    %724 = vector.load %arg2[%c0_363, %723, %c0_364, %c0_365] : memref<1x16x16x128xf32, #tpu.memory_space<vmem>>, vector<1x1x16x128xf32>
    %725 = vector.shape_cast %724 : vector<1x1x16x128xf32> to vector<16x128xf32>
    %726 = vector.broadcast %714 : f32 to vector<16x128xf32>
    %727 = arith.mulf %725, %726 : vector<16x128xf32>
    %728 = arith.mulf %3, %719 : vector<16x128xf32>
    %729 = arith.mulf %15, %722 : vector<16x128xf32>
    %730 = arith.addf %728, %729 : vector<16x128xf32>
    %731 = arith.mulf %27, %727 : vector<16x128xf32>
    %732 = arith.addf %730, %731 : vector<16x128xf32>
    %733 = arith.mulf %7, %719 : vector<16x128xf32>
    %734 = arith.mulf %19, %722 : vector<16x128xf32>
    %735 = arith.addf %733, %734 : vector<16x128xf32>
    %736 = arith.mulf %31, %727 : vector<16x128xf32>
    %737 = arith.addf %735, %736 : vector<16x128xf32>
    %738 = arith.mulf %11, %719 : vector<16x128xf32>
    %739 = arith.mulf %23, %722 : vector<16x128xf32>
    %740 = arith.addf %738, %739 : vector<16x128xf32>
    %741 = arith.mulf %35, %727 : vector<16x128xf32>
    %742 = arith.addf %740, %741 : vector<16x128xf32>
    %743 = arith.addf %737, %39 : vector<16x128xf32>
    %c1_i32_366 = arith.constant 1 : i32
    %744 = tpu.dynamic_rotate %732 by %c1_i32_366 dim 0 : vector<16x128xf32>, i32 -> vector<16x128xf32>
    %745 = arith.mulf %44, %744 : vector<16x128xf32>
    %746 = arith.addf %743, %745 : vector<16x128xf32>
    %c15_i32_367 = arith.constant 15 : i32
    %747 = tpu.dynamic_rotate %742 by %c15_i32_367 dim 0 : vector<16x128xf32>, i32 -> vector<16x128xf32>
    %748 = arith.mulf %48, %747 : vector<16x128xf32>
    %749 = arith.addf %746, %748 : vector<16x128xf32>
    %c0_368 = arith.constant 0 : index
    %750 = arith.index_cast %c14_i32 : i32 to index
    %c0_369 = arith.constant 0 : index
    %c0_370 = arith.constant 0 : index
    %751 = vector.load %arg5[%c0_368, %750, %c0_369, %c0_370] : memref<1x16x16x128xf32, #tpu.memory_space<vmem>>, vector<1x1x16x128xf32>
    %752 = vector.shape_cast %751 : vector<1x1x16x128xf32> to vector<16x128xf32>
    %753 = vector.shape_cast %749 : vector<16x128xf32> to vector<1x1x16x128xf32>
    tpu.vector_store %arg5[%c0_368, %750, %c0_369, %c0_370], %753 {strides = array<i32>} : memref<1x16x16x128xf32, #tpu.memory_space<vmem>>, vector<1x1x16x128xf32>,
    %c15_i32_371 = arith.constant 15 : i32
    %c1_i32_372 = arith.constant 1 : i32
    %754 = arith.subi %c15_i32_371, %c1_i32_372 : i32
    %c0_i32_373 = arith.constant 0 : i32
    %755 = arith.maxsi %754, %c0_i32_373 : i32
    %c1_i32_374 = arith.constant 1 : i32
    %756 = arith.addi %c15_i32_371, %c1_i32_374 : i32
    %c15_i32_375 = arith.constant 15 : i32
    %757 = arith.minsi %756, %c15_i32_375 : i32
    %c0_i32_376 = arith.constant 0 : i32
    %758 = arith.cmpi sgt, %c15_i32_371, %c0_i32_376 : i32
    %cst_377 = arith.constant 1.000000e+00 : f32
    %cst_378 = arith.constant 0.000000e+00 : f32
    %759 = arith.select %758, %cst_377, %cst_378 : f32
    %c15_i32_379 = arith.constant 15 : i32
    %760 = arith.cmpi slt, %c15_i32_371, %c15_i32_379 : i32
    %cst_380 = arith.constant 1.000000e+00 : f32
    %cst_381 = arith.constant 0.000000e+00 : f32
    %761 = arith.select %760, %cst_380, %cst_381 : f32
    %c0_382 = arith.constant 0 : index
    %762 = arith.index_cast %755 : i32 to index
    %c0_383 = arith.constant 0 : index
    %c0_384 = arith.constant 0 : index
    %763 = vector.load %arg2[%c0_382, %762, %c0_383, %c0_384] : memref<1x16x16x128xf32, #tpu.memory_space<vmem>>, vector<1x1x16x128xf32>
    %764 = vector.shape_cast %763 : vector<1x1x16x128xf32> to vector<16x128xf32>
    %765 = vector.broadcast %759 : f32 to vector<16x128xf32>
    %766 = arith.mulf %764, %765 : vector<16x128xf32>
    %c0_385 = arith.constant 0 : index
    %767 = arith.index_cast %c15_i32_371 : i32 to index
    %c0_386 = arith.constant 0 : index
    %c0_387 = arith.constant 0 : index
    %768 = vector.load %arg2[%c0_385, %767, %c0_386, %c0_387] : memref<1x16x16x128xf32, #tpu.memory_space<vmem>>, vector<1x1x16x128xf32>
    %769 = vector.shape_cast %768 : vector<1x1x16x128xf32> to vector<16x128xf32>
    %c0_388 = arith.constant 0 : index
    %770 = arith.index_cast %757 : i32 to index
    %c0_389 = arith.constant 0 : index
    %c0_390 = arith.constant 0 : index
    %771 = vector.load %arg2[%c0_388, %770, %c0_389, %c0_390] : memref<1x16x16x128xf32, #tpu.memory_space<vmem>>, vector<1x1x16x128xf32>
    %772 = vector.shape_cast %771 : vector<1x1x16x128xf32> to vector<16x128xf32>
    %773 = vector.broadcast %761 : f32 to vector<16x128xf32>
    %774 = arith.mulf %772, %773 : vector<16x128xf32>
    %775 = arith.mulf %3, %766 : vector<16x128xf32>
    %776 = arith.mulf %15, %769 : vector<16x128xf32>
    %777 = arith.addf %775, %776 : vector<16x128xf32>
    %778 = arith.mulf %27, %774 : vector<16x128xf32>
    %779 = arith.addf %777, %778 : vector<16x128xf32>
    %780 = arith.mulf %7, %766 : vector<16x128xf32>
    %781 = arith.mulf %19, %769 : vector<16x128xf32>
    %782 = arith.addf %780, %781 : vector<16x128xf32>
    %783 = arith.mulf %31, %774 : vector<16x128xf32>
    %784 = arith.addf %782, %783 : vector<16x128xf32>
    %785 = arith.mulf %11, %766 : vector<16x128xf32>
    %786 = arith.mulf %23, %769 : vector<16x128xf32>
    %787 = arith.addf %785, %786 : vector<16x128xf32>
    %788 = arith.mulf %35, %774 : vector<16x128xf32>
    %789 = arith.addf %787, %788 : vector<16x128xf32>
    %790 = arith.addf %784, %39 : vector<16x128xf32>
    %c1_i32_391 = arith.constant 1 : i32
    %791 = tpu.dynamic_rotate %779 by %c1_i32_391 dim 0 : vector<16x128xf32>, i32 -> vector<16x128xf32>
    %792 = arith.mulf %44, %791 : vector<16x128xf32>
    %793 = arith.addf %790, %792 : vector<16x128xf32>
    %c15_i32_392 = arith.constant 15 : i32
    %794 = tpu.dynamic_rotate %789 by %c15_i32_392 dim 0 : vector<16x128xf32>, i32 -> vector<16x128xf32>
    %795 = arith.mulf %48, %794 : vector<16x128xf32>
    %796 = arith.addf %793, %795 : vector<16x128xf32>
    %c0_393 = arith.constant 0 : index
    %797 = arith.index_cast %c15_i32_371 : i32 to index
    %c0_394 = arith.constant 0 : index
    %c0_395 = arith.constant 0 : index
    %798 = vector.load %arg5[%c0_393, %797, %c0_394, %c0_395] : memref<1x16x16x128xf32, #tpu.memory_space<vmem>>, vector<1x1x16x128xf32>
    %799 = vector.shape_cast %798 : vector<1x1x16x128xf32> to vector<16x128xf32>
    %800 = vector.shape_cast %796 : vector<16x128xf32> to vector<1x1x16x128xf32>
    tpu.vector_store %arg5[%c0_393, %797, %c0_394, %c0_395], %800 {strides = array<i32>} : memref<1x16x16x128xf32, #tpu.memory_space<vmem>>, vector<1x1x16x128xf32>,
    %c16_i32 = arith.constant 16 : i32
    return
  }
  func.func @transform_0(%arg0: i32, %arg1: i32) -> (i32, i32, i32, i32) {
    %c0_i32 = arith.constant 0 : i32
    %c0_i32_0 = arith.constant 0 : i32
    %c0_i32_1 = arith.constant 0 : i32
    return %arg0, %c0_i32, %c0_i32_0, %arg1 : i32, i32, i32, i32
  }
  func.func @transform_1(%arg0: i32, %arg1: i32) -> (i32, i32) {
    %c0_i32 = arith.constant 0 : i32
    %c0_i32_0 = arith.constant 0 : i32
    return %c0_i32, %arg1 : i32, i32
  }
  func.func @transform_2(%arg0: i32, %arg1: i32) -> (i32, i32) {
    %c0_i32 = arith.constant 0 : i32
    %c0_i32_0 = arith.constant 0 : i32
    return %c0_i32, %arg1 : i32, i32
  }
  func.func @transform_3(%arg0: i32, %arg1: i32) -> (i32, i32, i32, i32) {
    %c0_i32 = arith.constant 0 : i32
    %c0_i32_0 = arith.constant 0 : i32
    %c0_i32_1 = arith.constant 0 : i32
    return %arg0, %c0_i32, %c0_i32_0, %arg1 : i32, i32, i32, i32
  }
}

</mosaic_0001>

<bundles_post_ra>
// kernel: tpu_custom_call.1
= control target key start
LH: loop header
LB: loop body
LE: loop exit
PB: predicated region body
PF: predicated region fallthrough
CT: control target
= control target key end

     0   :  { %s3114_s0 = inlined_call_operand.hbm [shape: f32[2,16,16,256], index: 0, kind: input, shape index: {}]   ;;  %s3115_s1 = inlined_call_operand.hbm [shape: f32[9,256], index: 1, kind: input, shape index: {}]   ;;  %s3116_s2 = inlined_call_operand.vmem [shape: f32[1,256], index: 2, kind: input, shape index: {}]   ;;  %s3117_s3 = inlined_call_operand.hbm [shape: f32[2,16,16,256], index: 3, kind: output, shape index: {}]  }
   0x1   :  { %3126 = sst [smem:[#allocation15_spill]] %s3117_s3 }
   0x2   :  { %8 = vsyncpa [#allocation3], 0 }
   0x3   :  { %10 = vsyncpa [#allocation3 + $0x1], 0 }
   0x4   :  { %11 = vsyncpa [#allocation6], 0 }
   0x5   :  { %13 = vsyncpa [#allocation6 + $0x1], 0 }
   0x6   :  { %14 = vsyncpa [#allocation4], 0 }
   0x7   :  { %16 = vsyncpa [#allocation4 + $0x1], 0  ;;  %s1873_s12 = smov 0   ;;  %s1875_s13 = smov 0  }
   0x8   :  { %s1877_s14 = smov 0   ;;  %s1879_s15 = smov 0  }
   0x9   :  { %s1881_s16 = smov 0   ;;  %s1883_s17 = smov 0  }
   0xa   :  { %s1885_s18 = smov 0   ;;  %s1887_s19 = smov 0  }
   0xb   :  { %s1889_s20 = smov 0   ;;  %s1891_s21 = smov 0  }
   0xc   :  { %s1893_s22 = smov 0  }
   0xd LB: > { %3127 = sst [smem:[#allocation11_spill]] %s1813_s15  ;;  %s1389_s23 = sadd.s32 4294967295, %s1841_s22   ;;  %s1841_s22 = sphi %s1893_s22, %s22_s22   ;;  %s1837_s21 = sphi %s1891_s21, %s3161_s21   ;;  %s1833_s20 = sphi %s1889_s20, %s3160_s20   ;;  %s1829_s19 = sphi %s1887_s19, %s3159_s19   ;;  %s1825_s18 = sphi %s1885_s18, %s3158_s18   ;;  %s1821_s17 = sphi %s1883_s17, %s3157_s17   ;;  %s1817_s16 = sphi %s1881_s16, %s3156_s16   ;;  %s1813_s15 = sphi %s1879_s15, %s3155_s15   ;;  %s1809_s14 = sphi %s1877_s14, %s3154_s14   ;;  %s1805_s13 = sphi %s1875_s13, %s3153_s13   ;;  %s1801_s12 = sphi %s1873_s12, %s3152_s12  }
   0xe   : > { %3128 = sst [smem:[#allocation12_spill]] %s1829_s19  ;;  %s1390_s24 = sadd.s32 4294967294, %s1841_s22  }
   0xf   : > { %s31_s25 = sadd.s32 1, %s1833_s20  ;;  %s34_s26 = sadd.s32 1, %s1837_s21 }
  0x10   : > { %p32_p0 = scmp.ge.s32.totalorder %s31_s25, 2  ;;  %s43_s27 = sadd.s32 1, %s1821_s17 }
  0x11   : > { %p50_p1 = scmp.ne.s32.totalorder %s1821_s17, %s1817_s16  ;;  %p3122_p2 = scmp.eq.s32.totalorder %s1841_s22, 0 }
  0x12   : > { %s3163_s25 = smov (%p32_p0, %s31_s25), 0  ;;  %s3165_s26 = smov (!%p32_p0, %s34_s26), %s1837_s21 }
  0x13   : > { %3129 = sst [smem:[#allocation13_spill]] %s3163_s25  ;;  %s1941_s28 = ssub.s32 %s1833_s20, %s3163_s25 }
  0x14   : > { %p1948_p3 = por %p3122_p2, %p50_p1  ;;  %p36_p4 = scmp.ge.s32.totalorder %s3165_s26, 2 }
  0x15   : > { %p56_p5 = scmp.ne.s32.totalorder %s1817_s16, %s1813_s15  ;;  %p1954_p6 = scmp.eq.s32.totalorder %s1389_s23, 0 }
  0x16   : > { %s3167_s26 = smov (%p36_p4, %s3165_s26), 0  ;;  %p134_p9 = scmp.eq.s32.totalorder %s1389_s23, 3 }
  0x17   : > { %3132 = sst [smem:[#allocation14_spill]] %s3167_s26  ;;  %p1963_p8 = por %p1954_p6, %p56_p5 }
  0x18   : > { %s38_s5 = ssub.s32 %s1837_s21, %s3167_s26  ;;  %p140_p10 = scmp.eq.s32.totalorder %s1390_s24, 3 }
  0x19   : > { %s40_s6 = sor.u32 %s1941_s28, %s38_s5  ;;  %p1973_p11 = por %p134_p9, %p50_p1 }
  0x1a   : > { %p41_p12 = scmp.eq.s32.totalorder %s40_s6, 0  ;;  %p1977_p13 = por %p140_p10, %p56_p5 }
  0x1b   : > { %p1554_p0 = scmp.lt.s32.totalorder %s1841_s22, 4  ;;  %s160_s10 = sand.u32 1, %s1821_s17  }
  0x1c   : > { %s3135_s8 = scalar_select %p1977_p13, 1, 0 }
  0x1d   : > { %s1983_s9 = scalar_select %p41_p12, %s1821_s17, %s43_s27  }
  0x1e   : > { %s1394_s11 = sshll.u32 %s1837_s21, 6  ;;  %s1393_s23 = sshll.u32 %s160_s10, 8 }
  0x1f   : > { %s169_s24 = sadd.s32 %s1833_s20, %s1394_s11  ;;  %s164_s5 = scalar_lea.vmem [#allocation2], %s1393_s23 }
  0x20   : > { %s1395_s26 = sshll.u32 %s169_s24, 7  ;;  %s172_s25 = sshll.u32 %s164_s5, 4  ;;  %s173_s25 = int_to_ptr.vmem [resolvable:$true] %s172_s25 }
  0x21   : > { %s171_s19 = scalar_lea.hbm %s3114_s0, %s1395_s26  ;;  %p1995_p1 = pnand %p1554_p0, %p1948_p3 }
  0x22   : > { %p1398_p4 = scmp.ge.s32.totalorder %s1841_s22, 1  ;;  %s161_s27 = scalar_lea.sflag [#allocation3], %s160_s10 }
  0x23   : > { %p1663_p5 = pneg %p1995_p1  ;;  %s1674_s11 = scalar_lea.vmem %s173_s25, 4096 }
  0x24   : > { %p1675_p9 = scmp.ne.s32.totalorder %s173_s25, %s1674_s11  ;;  %s1843_s23 = smov [#allocation2]  }
  0x25   : > { %s1679_s24 = sshll.u32 %s1843_s23, 4  ;;  %s1680_s24 = int_to_ptr.vmem [resolvable:$false] %s1679_s24 }
  0x26   : > { %p1677_p10 = pnand %p1675_p9, %p1663_p5  ;;  %s1681_s3 = scalar_lea.vmem %s1680_s24, 8192 }
  0x27   : > { %p1682_p2 = scmp.lt.s32.totalorder %s173_s25, %s1680_s24  ;;  %p1683_p7 = scmp.lt.s32.totalorder %s1681_s3, %s1674_s11 }
  0x28   : > { %p1678_p12 = pneg %p1677_p10 }
  0x29   : > { %p1684_p13 = por %p1683_p7, %p1682_p2 }
  0x2b   : > { %p1685_p3 = pnand %p1684_p13, %p1678_p12 }
  0x2d   : > { %1688 = shalt.err (!%p1685_p3)
}
  0x2e   : > { %s3123_s15 = smov 256   ;;  %s3124_s26 = smov 128  }
  0x2f   : > { %s3125_s29 = smov 8   ;;  %p206_p2 = scmp.lt.s32.totalorder %s1841_s22, 5 }
  0x30   : > { %1546 = dma.hbm_to_vmem [thread:$0]  (!%p1995_p1), %s171_s19, 4096, %s173_s25, %s161_s27, %s3123_s15, %s3124_s26, %s3125_s29  }
  0x31   : > { %p2010_p7 = pnand %p1398_p4, %p206_p2  ;;  %s69_s5 = sadd.s32 1, %s1809_s14 }
  0x32   : > { %p76_p13 = scmp.ne.s32.totalorder %s1809_s14, %s1805_s13  ;;  %p3138_p5 = scmp.eq.s32.totalorder %s1941_s28, 0 }
  0x33   : > { %p3139_p9 = scmp.eq.s32.totalorder %s1841_s22, 0  ;;  %p82_p12 = scmp.ne.s32.totalorder %s1805_s13, %s1801_s12 }
  0x34   : > { %s2020_s11 = scalar_select %p3138_p5, %s1809_s14, %s69_s5  }
  0x35   : > { %p78_p10 = por %p76_p13, %p3139_p9  ;;  %s182_s23 = sand.u32 1, %s1809_s14  }
  0x36   : > { %s1397_s6 = sshll.u32 %s1833_s20, 7  ;;  %p2030_p3 = por %p82_p12, %p1954_p6 }
  0x37   : > { %s1396_s19 = sshll.u32 %s182_s23, 4  ;;  %s191_s3 = scalar_lea.hbm %s3115_s1, %s1397_s6 }
  0x38   : > { %p2039_p1 = pnand %p1554_p0, %p78_p10  ;;  %s186_s5 = scalar_lea.vmem [#allocation5], %s1396_s19 }
  0x39   : > { %s192_s12 = sshll.u32 %s186_s5, 4  ;;  %s183_s15 = scalar_lea.sflag [#allocation6], %s182_s23  ;;  %s193_s12 = int_to_ptr.vmem [resolvable:$true] %s192_s12 }
  0x3a   : > { %p1691_p6 = pneg %p2039_p1  ;;  %s1702_s30 = scalar_lea.vmem %s193_s12, 256 }
  0x3b   : > { %p1703_p4 = scmp.ne.s32.totalorder %s193_s12, %s1702_s30  ;;  %s1847_s26 = smov [#allocation5]  }
  0x3c   : > { %s1707_s29 = sshll.u32 %s1847_s26, 4  ;;  %s1708_s29 = int_to_ptr.vmem [resolvable:$false] %s1707_s29 }
  0x3d   : > { %p1705_p2 = pnand %p1703_p4, %p1691_p6  ;;  %s1709_s6 = scalar_lea.vmem %s1708_s29, 512 }
  0x3e   : > { %p1710_p5 = scmp.lt.s32.totalorder %s193_s12, %s1708_s29  ;;  %p1711_p0 = scmp.lt.s32.totalorder %s1709_s6, %s1702_s30 }
  0x3f   : > { %p1706_p13 = pneg %p1705_p2 }
  0x40   : > { %p1712_p9 = por %p1711_p0, %p1710_p5 }
  0x42   : > { %p1713_p10 = pnand %p1712_p9, %p1706_p13 }
  0x44   : > { %1716 = shalt.err (!%p1713_p10)
}
  0x45   : > { %s3142_s19 = smov 8   ;;  %s3143_s25 = smov 128  }
  0x46   : > { %s3144_s23 = smov 256   ;;  %210 = sbr.rel (%p2010_p7) target bundleno = 292 (0x124), region = 32 }
  0x47   : > { %1549 = dma.hbm_to_vmem [thread:$0]  (!%p2039_p1), %s191_s3, 256, %s193_s12, %s183_s15, %s3144_s23, %s3143_s25, %s3142_s19  }
  0x48   : > { %s2053_s27 = sand.u32 (!%p2010_p7), 1, %s1817_s16  }
  0x49   : > { %s1399_s26 = sshll.u32 (!%p2010_p7), %s2053_s27, 8  ;;  %s213_s29 = scalar_lea.sflag (!%p2010_p7), [#allocation3], %s2053_s27 }
  0x4a   : > { %s2059_s5 = scalar_lea.vmem (!%p2010_p7), [#allocation2], %s1399_s26 }
  0x4b   : > { %1788 = dma.done.wait (%p1963_p8), %s213_s29, 4096  }
  0x4c   : > { %1790 = vsyncadd (%p1963_p8), %s213_s29, 4294963200  ;;  %s221_s15 = sand.u32 1, %s1805_s13  }
  0x4d   : > { %s1400_s10 = sshll.u32 %s221_s15, 4  ;;  %s222_s3 = scalar_lea.sflag [#allocation6], %s221_s15 }
  0x4e   : > { %s2066_s28 = scalar_lea.vmem [#allocation5], %s1400_s10 }
  0x4f   : > { %1792 = dma.done.wait (%p2030_p3), %s222_s3, 256  }
  0x50   : > { %1794 = vsyncadd (%p2030_p3), %s222_s3, 4294967040  ;;  %v311_v0 = vlaneseq  ;;  %p256_p8 = scmp.lt.s32.totalorder %s1825_s18, 1  ;;  %v2081_v3 = vld [vmem:[%s2066_s28] ss:$0 sm:$0xff]  ;;  %v2084_v4 = vld [vmem:[%s2066_s28 + $0x1] ss:$0 sm:$0xff] }
  0x51   : > { %v2087_v5 = vld [vmem:[%s2066_s28 + $0x2] ss:$0 sm:$0xff]  ;;  %v2090_v6 = vld [vmem:[%s2066_s28 + $0x3] ss:$0 sm:$0xff]  ;;  %v2093_v7 = vld [vmem:[%s2066_s28 + $0x4] ss:$0 sm:$0xff] }
  0x52   : > { %v2072_v1 = vshrl.u32 %v311_v0, 7  ;;  %s2077_s4 = scalar_select %p256_p8, %s1825_s18, 1  ;;  %v2096_v8 = vld [vmem:[%s2066_s28 + $0x6] ss:$0 sm:$0xff]  ;;  %v2099_v9 = vld [vmem:[%s2066_s28 + $0x7] ss:$0 sm:$0xff] }
  0x53   : > { %v2102_v10 = vld [vmem:[%s2066_s28 + $0x5] ss:$0 sm:$0xff]  ;;  %v1848_v11 = vmov 0.0   ;;  %v2110_v14 = vld [vmem:[%s2059_s5 + $0x8] sm:$0xff]  ;;  %v2124_v20 = vld [vmem:[%s2059_s5 + $0x18] sm:$0xff]  ;;  %s2216_s6 = scalar_lea.vmem [#allocation7], %s1399_s26 }
  0x54   : > { %v313_v2 = vadd.s32 8, %v2072_v1  ;;  %vm314_vm0 = vcmp.gt.s32.totalorder %v2072_v1, 0  ;;  %v2107_v13 = vld [vmem:[%s2059_s5] sm:$0xff]  ;;  %vm367_vm2 = vcmp.lt.s32.totalorder %v2072_v1, 1  ;;  %v2116_v16 = vld [vmem:[%s2066_s28 + $0x8] ss:$0 sm:$0xff]  ;;  %v336_v22 = vmul.f32 %v2090_v6, %v2110_v14  ;;  %s2143_s30 = scalar_lea.vmem %s3116_s2, %s2077_s4 }
  0x55   : > { %v2104_v12 = vsel %vm314_vm0, 1.0, %v1848_v11  ;;  %v328_v17 = vmul.f32 0.0, %v2107_v13  ;;  %v329_v18 = vmul.f32 0.0, %v2110_v14  ;;  %v2121_v19 = vld [vmem:[%s2059_s5 + $0x10] sm:$0xff]  ;;  %v335_v21 = vmul.f32 %v2090_v6, %v2107_v13  ;;  %v2159_v39 = vld [vmem:[%s2143_s30] ss:$0 sm:$0xff] }
  0x56   : > { %vm321_vm1 = vcmp.lt.s32.totalorder %v313_v2, 15  ;;  %vm376_vm3 = vcmp.lt.s32.totalorder %v2072_v1, 7  ;;  %v339_v23 = vmul.f32 %v2121_v19, %v2096_v8  ;;  %v340_v24 = vmul.f32 %v2124_v20, %v2096_v8  ;;  %v2172_v59 = vld [vmem:[%s2059_s5 + $0x20] sm:$0xff]  ;;  %s3145_s19 = sld [smem:[#allocation12_spill]]  ;;  %s1849_s24 = smov [#allocation7]  }
  0x57   : > { %v2113_v15 = vsel %vm321_vm1, 1.0, %v1848_v11  ;;  %v345_v25 = vmul.f32 %v2093_v7, %v2107_v13  ;;  %v349_v26 = vmul.f32 %v2121_v19, %v2099_v9  ;;  %v333_v27 = vmul.f32 %v2081_v3, %v328_v17  ;;  %s3146_s15 = sld [smem:[#allocation15_spill]]  ;;  %s1721_s12 = sshll.u32 %s1849_s24, 4  ;;  %s1722_s12 = int_to_ptr.vmem [resolvable:$false] %s1721_s12 }
  0x58   : > { %v334_v28 = vmul.f32 %v2081_v3, %v329_v18  ;;  %v343_v29 = vmul.f32 %v2084_v4, %v328_v17  ;;  %v353_v30 = vmul.f32 %v2087_v5, %v328_v17  ;;  %v354_v31 = vmul.f32 %v2087_v5, %v329_v18 }
  0x59   : > { %v355_v32 = vmul.f32 %v2102_v10, %v2107_v13  ;;  %v356_v33 = vmul.f32 %v2102_v10, %v2110_v14  ;;  %v359_v34 = vmul.f32 %v2121_v19, %v2116_v16  ;;  %v337_v35 = vadd.f32 %v335_v21, %v333_v27  ;;  %v2191_v21 = vld [vmem:[%s2059_s5 + $0x28] sm:$0xff] }
  0x5a   : > { %v338_v36 = vadd.f32 %v336_v22, %v334_v28  ;;  %v347_v37 = vadd.f32 %v345_v25, %v343_v29  ;;  %v360_v38 = vmul.f32 %v2124_v20, %v2116_v16  ;;  %v344_v42 = vmul.f32 %v2084_v4, %v329_v18 }
  0x5b   : > { %v357_v40 = vadd.f32 %v355_v32, %v353_v30  ;;  %v358_v41 = vadd.f32 %v356_v33, %v354_v31  ;;  %v346_v43 = vmul.f32 %v2093_v7, %v2110_v14  ;;  %v341_v44 = vadd.f32 %v339_v23, %v337_v35 }
  0x5c   : > { %v342_v45 = vadd.f32 %v340_v24, %v338_v36  ;;  %v351_v46 = vadd.f32 %v349_v26, %v347_v37  ;;  %v350_v47 = vmul.f32 %v2124_v20, %v2099_v9  ;;  %v392_v51 = vmul.f32 %v2081_v3, %v2107_v13  ;;  %s1533_s25 = sshll.u32 %s3145_s19, 6 }
  0x5d   : > { %v361_v48 = vadd.f32 %v359_v34, %v357_v40  ;;  %v362_v49 = vadd.f32 %v360_v38, %v358_v41  ;;  %v348_v50 = vadd.f32 %v346_v43, %v344_v42  ;;  %v365_v53 = vrot.slane %v341_v44, 7  ;;  %s1266_s23 = sadd.s32 %s1825_s18, %s1533_s25  ;;  %s1269_s18 = sshll.u32 %s2216_s6, 4  ;;  %s3051_s18 = int_to_ptr.vmem [resolvable:$true] %s1269_s18 }
  0x5e   : > { %v363_v52 = vadd.f32 %v2159_v39, %v351_v46  ;;  %v366_v54 = vrot.slane %v342_v45, 7  ;;  %v393_v55 = vmul.f32 %v2081_v3, %v2110_v14  ;;  %v394_v60 = vmul.f32 %v2121_v19, %v2090_v6  ;;  %s1534_s26 = sshll.u32 %s1266_s23, 7  ;;  %s3147_s10 = smov %s3146_s15 }
  0x5f   : > { %v374_v56 = vrot.slane %v361_v48, 1  ;;  %v375_v57 = vrot.slane %v362_v49, 1  ;;  %v352_v58 = vadd.f32 %v350_v47, %v348_v50  ;;  %v395_v63 = vmul.f32 %v2124_v20, %v2090_v6  ;;  %s3049_s3 = scalar_lea.hbm %s3146_s15, %s1534_s26  ;;  %s1717_s4 = scalar_lea.vmem %s3051_s18, 4096 }
  0x60   : > { %v369_v61 = vsel %vm367_vm2, %v366_v54, %v365_v53  ;;  %v368_v62 = vsel %vm367_vm2, %v365_v53, %v366_v54  ;;  %v398_v0 = vmul.f32 %v2172_v59, %v2096_v8  ;;  %v396_v23 = vadd.f32 %v394_v60, %v392_v51  ;;  %p1718_p7 = scmp.ne.s32.totalorder %s3051_s18, %s1717_s4  ;;  %p1724_p1 = scmp.lt.s32.totalorder %s3051_s18, %s1722_s12 }
  0x61   : > { %v370_v2 = vmul.f32 %v2104_v12, %v369_v61  ;;  %v377_v11 = vsel %vm376_vm3, %v374_v56, %v375_v57  ;;  %v364_v17 = vadd.f32 %v2159_v39, %v352_v58  ;;  %v378_v18 = vsel %vm376_vm3, %v375_v57, %v374_v56  ;;  %v2235_v57 = vld [vmem:[%s2059_s5 + $0x30] sm:$0xff] }
  0x62   : > { %v380_v22 = vmul.f32 %v2113_v15, %v378_v18  ;;  %v397_v24 = vadd.f32 %v395_v63, %v393_v55  ;;  %v399_v25 = vmul.f32 %v2191_v21, %v2096_v8  ;;  %v402_v28 = vmul.f32 %v2084_v4, %v2107_v13  ;;  %p1719_p12 = pnand %p1718_p7, %p1973_p11 }
  0x63   : > { %v372_v26 = vadd.f32 %v370_v2, %v363_v52  ;;  %v373_v27 = vadd.f32 %v368_v62, %v364_v17  ;;  %v404_v29 = vmul.f32 %v2121_v19, %v2093_v7  ;;  %v400_v30 = vadd.f32 %v398_v0, %v396_v23  ;;  %v2246_v17 = vld [vmem:[%s2059_s5 + $0x38] sm:$0xff] }
  0x64   : > { %v401_v31 = vadd.f32 %v399_v25, %v397_v24  ;;  %v408_v32 = vmul.f32 %v2172_v59, %v2099_v9  ;;  %v412_v33 = vmul.f32 %v2087_v5, %v2107_v13  ;;  %v413_v37 = vmul.f32 %v2087_v5, %v2110_v14  ;;  %p1720_p3 = pneg %p1719_p12 }
  0x65   : > { %v381_v34 = vadd.f32 %v377_v11, %v372_v26  ;;  %v382_v35 = vadd.f32 %v380_v22, %v373_v27  ;;  %v406_v36 = vadd.f32 %v404_v29, %v402_v28  ;;  %v414_v38 = vmul.f32 %v2121_v19, %v2102_v10 }
  0x66   : > { %v415_v40 = vmul.f32 %v2124_v20, %v2102_v10  ;;  %v418_v41 = vmul.f32 %v2172_v59, %v2116_v16  ;;  %v419_v42 = vmul.f32 %v2191_v21, %v2116_v16  ;;  %v424_v43 = vrot.slane %v400_v30, 7 }
  0x67   : > { %383 = vst [vmem:[%s2216_s6] sm:$0xff] %v381_v34  ;;  %384 = vst [vmem:[%s2216_s6 + $0x8] sm:$0xff] %v382_v35  ;;  %v410_v13 = vadd.f32 %v408_v32, %v406_v36  ;;  %v425_v44 = vrot.slane %v401_v31, 7  ;;  %v403_v45 = vmul.f32 %v2084_v4, %v2110_v14  ;;  %v416_v46 = vadd.f32 %v414_v38, %v412_v33 }
  0x68   : > { %v417_v47 = vadd.f32 %v415_v40, %v413_v37  ;;  %v405_v48 = vmul.f32 %v2124_v20, %v2093_v7  ;;  %v409_v49 = vmul.f32 %v2191_v21, %v2099_v9  ;;  %v450_v14 = vmul.f32 %v2121_v19, %v2081_v3 }
  0x69   : > { %v422_v50 = vadd.f32 %v2159_v39, %v410_v13  ;;  %v427_v51 = vsel %vm367_vm2, %v425_v44, %v424_v43  ;;  %v426_v52 = vsel %vm367_vm2, %v424_v43, %v425_v44  ;;  %v420_v53 = vadd.f32 %v418_v41, %v416_v46 }
  0x6a   : > { %v421_v54 = vadd.f32 %v419_v42, %v417_v47  ;;  %v428_v55 = vmul.f32 %v2104_v12, %v427_v51  ;;  %v407_v56 = vadd.f32 %v405_v48, %v403_v45  ;;  %v451_v58 = vmul.f32 %v2124_v20, %v2081_v3 }
  0x6b   : > { %v452_v60 = vmul.f32 %v2172_v59, %v2090_v6  ;;  %v453_v61 = vmul.f32 %v2191_v21, %v2090_v6  ;;  %v456_v62 = vmul.f32 %v2235_v57, %v2096_v8  ;;  %v432_v0 = vrot.slane %v420_v53, 1 }
  0x6c   : > { %v430_v63 = vadd.f32 %v428_v55, %v422_v50  ;;  %v433_v2 = vrot.slane %v421_v54, 1  ;;  %v411_v11 = vadd.f32 %v409_v49, %v407_v56  ;;  %v457_v23 = vmul.f32 %v2246_v17, %v2096_v8  ;;  %v2291_v56 = vld [vmem:[%s2059_s5 + $0x40] sm:$0xff] }
  0x6d   : > { %v454_v18 = vadd.f32 %v452_v60, %v450_v14  ;;  %v455_v22 = vadd.f32 %v453_v61, %v451_v58  ;;  %v460_v24 = vmul.f32 %v2121_v19, %v2084_v4  ;;  %v462_v28 = vmul.f32 %v2172_v59, %v2093_v7 }
  0x6e   : > { %v434_v25 = vsel %vm376_vm3, %v432_v0, %v433_v2  ;;  %v423_v26 = vadd.f32 %v2159_v39, %v411_v11  ;;  %v435_v27 = vsel %vm376_vm3, %v433_v2, %v432_v0  ;;  %v466_v35 = vmul.f32 %v2235_v57, %v2099_v9 }
  0x6f   : > { %v438_v29 = vadd.f32 %v434_v25, %v430_v63  ;;  %v437_v30 = vmul.f32 %v2113_v15, %v435_v27  ;;  %v458_v31 = vadd.f32 %v456_v62, %v454_v18  ;;  %v459_v32 = vadd.f32 %v457_v23, %v455_v22  ;;  %v2298_v63 = vld [vmem:[%s2059_s5 + $0x48] sm:$0xff] }
  0x70   : > { %v431_v33 = vadd.f32 %v426_v52, %v423_v26  ;;  %v464_v34 = vadd.f32 %v462_v28, %v460_v24  ;;  %v470_v36 = vmul.f32 %v2121_v19, %v2087_v5  ;;  %v471_v37 = vmul.f32 %v2124_v20, %v2087_v5 }
  0x71   : > { %1420 = vst [vmem:[%s2216_s6 + $0x10] sm:$0xff] %v438_v29  ;;  %v472_v38 = vmul.f32 %v2172_v59, %v2102_v10  ;;  %v473_v40 = vmul.f32 %v2191_v21, %v2102_v10  ;;  %v476_v41 = vmul.f32 %v2235_v57, %v2116_v16  ;;  %v477_v43 = vmul.f32 %v2246_v17, %v2116_v16 }
  0x72   : > { %v439_v42 = vadd.f32 %v437_v30, %v431_v33  ;;  %v468_v13 = vadd.f32 %v466_v35, %v464_v34  ;;  %v482_v44 = vrot.slane %v458_v31, 7  ;;  %v483_v46 = vrot.slane %v459_v32, 7 }
  0x73   : > { %v474_v19 = vadd.f32 %v472_v38, %v470_v36  ;;  %v475_v45 = vadd.f32 %v473_v40, %v471_v37  ;;  %v461_v47 = vmul.f32 %v2124_v20, %v2084_v4  ;;  %v463_v49 = vmul.f32 %v2191_v21, %v2093_v7 }
  0x74   : > { %1421 = vst [vmem:[%s2216_s6 + $0x18] sm:$0xff] %v439_v42  ;;  %v480_v48 = vadd.f32 %v2159_v39, %v468_v13  ;;  %v467_v50 = vmul.f32 %v2246_v17, %v2099_v9  ;;  %v508_v51 = vmul.f32 %v2172_v59, %v2081_v3  ;;  %v485_v53 = vsel %vm367_vm2, %v483_v46, %v482_v44 }
  0x75   : > { %v478_v52 = vadd.f32 %v476_v41, %v474_v19  ;;  %v479_v14 = vadd.f32 %v477_v43, %v475_v45  ;;  %v484_v20 = vsel %vm367_vm2, %v482_v44, %v483_v46  ;;  %v486_v54 = vmul.f32 %v2104_v12, %v485_v53 }
  0x76   : > { %v465_v55 = vadd.f32 %v463_v49, %v461_v47  ;;  %v509_v58 = vmul.f32 %v2191_v21, %v2081_v3  ;;  %v510_v60 = vmul.f32 %v2235_v57, %v2090_v6  ;;  %v511_v0 = vmul.f32 %v2246_v17, %v2090_v6 }
  0x77   : > { %v490_v61 = vrot.slane %v478_v52, 1  ;;  %v491_v62 = vrot.slane %v479_v14, 1  ;;  %v514_v2 = vmul.f32 %v2291_v56, %v2096_v8  ;;  %v488_v11 = vadd.f32 %v486_v54, %v480_v48 }
  0x78   : > { %v469_v18 = vadd.f32 %v467_v50, %v465_v55  ;;  %v512_v22 = vadd.f32 %v510_v60, %v508_v51  ;;  %v515_v23 = vmul.f32 %v2298_v63, %v2096_v8  ;;  %v513_v26 = vadd.f32 %v511_v0, %v509_v58  ;;  %v2347_v60 = vld [vmem:[%s2059_s5 + $0x50] sm:$0xff] }
  0x79   : > { %v492_v24 = vsel %vm376_vm3, %v490_v61, %v491_v62  ;;  %v493_v25 = vsel %vm376_vm3, %v491_v62, %v490_v61  ;;  %v518_v27 = vmul.f32 %v2172_v59, %v2084_v4  ;;  %v520_v33 = vmul.f32 %v2235_v57, %v2093_v7 }
  0x7a   : > { %v496_v28 = vadd.f32 %v492_v24, %v488_v11  ;;  %v481_v29 = vadd.f32 %v2159_v39, %v469_v18  ;;  %v495_v30 = vmul.f32 %v2113_v15, %v493_v25  ;;  %v516_v31 = vadd.f32 %v514_v2, %v512_v22  ;;  %v2354_v11 = vld [vmem:[%s2059_s5 + $0x58] sm:$0xff] }
  0x7b   : > { %v517_v32 = vadd.f32 %v515_v23, %v513_v26  ;;  %v524_v34 = vmul.f32 %v2291_v56, %v2099_v9  ;;  %v528_v35 = vmul.f32 %v2172_v59, %v2087_v5  ;;  %v529_v37 = vmul.f32 %v2191_v21, %v2087_v5 }
  0x7c   : > { %1428 = vst [vmem:[%s2216_s6 + $0x20] sm:$0xff] %v496_v28  ;;  %v489_v36 = vadd.f32 %v484_v20, %v481_v29  ;;  %v530_v38 = vmul.f32 %v2235_v57, %v2102_v10  ;;  %v531_v40 = vmul.f32 %v2246_v17, %v2102_v10  ;;  %v522_v41 = vadd.f32 %v520_v33, %v518_v27 }
  0x7d   : > { %v534_v42 = vmul.f32 %v2291_v56, %v2116_v16  ;;  %v535_v13 = vmul.f32 %v2298_v63, %v2116_v16  ;;  %v540_v59 = vrot.slane %v516_v31, 7  ;;  %v541_v45 = vrot.slane %v517_v32, 7 }
  0x7e   : > { %v497_v43 = vadd.f32 %v495_v30, %v489_v36  ;;  %v532_v44 = vadd.f32 %v530_v38, %v528_v35  ;;  %v533_v19 = vadd.f32 %v531_v40, %v529_v37  ;;  %v526_v46 = vadd.f32 %v524_v34, %v522_v41 }
  0x7f   : > { %v519_v47 = vmul.f32 %v2191_v21, %v2084_v4  ;;  %v521_v48 = vmul.f32 %v2246_v17, %v2093_v7  ;;  %v525_v49 = vmul.f32 %v2298_v63, %v2099_v9  ;;  %v543_v52 = vsel %vm367_vm2, %v541_v45, %v540_v59 }
  0x80   : > { %1429 = vst [vmem:[%s2216_s6 + $0x28] sm:$0xff] %v497_v43  ;;  %v536_v50 = vadd.f32 %v534_v42, %v532_v44  ;;  %v537_v51 = vadd.f32 %v535_v13, %v533_v19  ;;  %v542_v14 = vsel %vm367_vm2, %v540_v59, %v541_v45  ;;  %v538_v53 = vadd.f32 %v2159_v39, %v526_v46 }
  0x81   : > { %v544_v21 = vmul.f32 %v2104_v12, %v543_v52  ;;  %v523_v20 = vadd.f32 %v521_v48, %v519_v47  ;;  %v566_v54 = vmul.f32 %v2235_v57, %v2081_v3  ;;  %v567_v61 = vmul.f32 %v2246_v17, %v2081_v3 }
  0x82   : > { %v548_v55 = vrot.slane %v536_v50, 1  ;;  %v549_v58 = vrot.slane %v537_v51, 1  ;;  %v568_v62 = vmul.f32 %v2291_v56, %v2090_v6  ;;  %v569_v18 = vmul.f32 %v2298_v63, %v2090_v6 }
  0x83   : > { %v546_v0 = vadd.f32 %v544_v21, %v538_v53  ;;  %v527_v2 = vadd.f32 %v525_v49, %v523_v20  ;;  %v572_v22 = vmul.f32 %v2347_v60, %v2096_v8  ;;  %v573_v26 = vmul.f32 %v2354_v11, %v2096_v8 }
  0x84   : > { %v550_v23 = vsel %vm376_vm3, %v548_v55, %v549_v58  ;;  %v551_v24 = vsel %vm376_vm3, %v549_v58, %v548_v55  ;;  %v570_v25 = vadd.f32 %v568_v62, %v566_v54  ;;  %v571_v30 = vadd.f32 %v569_v18, %v567_v61 }
  0x85   : > { %v554_v27 = vadd.f32 %v550_v23, %v546_v0  ;;  %v539_v28 = vadd.f32 %v2159_v39, %v527_v2  ;;  %v553_v29 = vmul.f32 %v2113_v15, %v551_v24  ;;  %v576_v32 = vmul.f32 %v2235_v57, %v2084_v4  ;;  %v2407_v0 = vld [vmem:[%s2059_s5 + $0x60] sm:$0xff]  ;;  %v2410_v2 = vld [vmem:[%s2059_s5 + $0x68] sm:$0xff] }
  0x86   : > { %v574_v31 = vadd.f32 %v572_v22, %v570_v25  ;;  %v578_v33 = vmul.f32 %v2291_v56, %v2093_v7  ;;  %v582_v34 = vmul.f32 %v2347_v60, %v2099_v9  ;;  %v575_v36 = vadd.f32 %v573_v26, %v571_v30 }
  0x87   : > { %1436 = vst [vmem:[%s2216_s6 + $0x30] sm:$0xff] %v554_v27  ;;  %v547_v35 = vadd.f32 %v542_v14, %v539_v28  ;;  %v586_v37 = vmul.f32 %v2235_v57, %v2087_v5  ;;  %v587_v38 = vmul.f32 %v2246_v17, %v2087_v5  ;;  %v588_v41 = vmul.f32 %v2291_v56, %v2102_v10 }
  0x88   : > { %v580_v40 = vadd.f32 %v578_v33, %v576_v32  ;;  %v589_v42 = vmul.f32 %v2298_v63, %v2102_v10  ;;  %v592_v13 = vmul.f32 %v2347_v60, %v2116_v16  ;;  %v593_v43 = vmul.f32 %v2354_v11, %v2116_v16 }
  0x89   : > { %v555_v59 = vadd.f32 %v553_v29, %v547_v35  ;;  %v598_v44 = vrot.slane %v574_v31, 7  ;;  %v599_v19 = vrot.slane %v575_v36, 7  ;;  %v590_v45 = vadd.f32 %v588_v41, %v586_v37 }
  0x8a   : > { %v584_v57 = vadd.f32 %v582_v34, %v580_v40  ;;  %v591_v46 = vadd.f32 %v589_v42, %v587_v38  ;;  %v577_v47 = vmul.f32 %v2246_v17, %v2084_v4  ;;  %v579_v49 = vmul.f32 %v2298_v63, %v2093_v7 }
  0x8b   : > { %1437 = vst [vmem:[%s2216_s6 + $0x38] sm:$0xff] %v555_v59  ;;  %v601_v48 = vsel %vm367_vm2, %v599_v19, %v598_v44  ;;  %v583_v50 = vmul.f32 %v2354_v11, %v2099_v9  ;;  %v600_v51 = vsel %vm367_vm2, %v598_v44, %v599_v19  ;;  %v594_v52 = vadd.f32 %v592_v13, %v590_v45 }
  0x8c   : > { %v595_v14 = vadd.f32 %v593_v43, %v591_v46  ;;  %v596_v53 = vadd.f32 %v2159_v39, %v584_v57  ;;  %v602_v17 = vmul.f32 %v2104_v12, %v601_v48  ;;  %v581_v21 = vadd.f32 %v579_v49, %v577_v47 }
  0x8d   : > { %v624_v20 = vmul.f32 %v2291_v56, %v2081_v3  ;;  %v625_v54 = vmul.f32 %v2298_v63, %v2081_v3  ;;  %v626_v55 = vmul.f32 %v2347_v60, %v2090_v6  ;;  %v606_v61 = vrot.slane %v594_v52, 1 }
  0x8e   : > { %v604_v58 = vadd.f32 %v602_v17, %v596_v53  ;;  %v607_v62 = vrot.slane %v595_v14, 1  ;;  %v627_v18 = vmul.f32 %v2354_v11, %v2090_v6  ;;  %v585_v22 = vadd.f32 %v583_v50, %v581_v21 }
  0x8f   : > { %v628_v23 = vadd.f32 %v626_v55, %v624_v20  ;;  %v630_v24 = vmul.f32 %v2407_v0, %v2096_v8  ;;  %v631_v25 = vmul.f32 %v2410_v2, %v2096_v8  ;;  %v634_v29 = vmul.f32 %v2291_v56, %v2084_v4  ;;  %v2459_v55 = vld [vmem:[%s2059_s5 + $0x70] sm:$0xff] }
  0x90   : > { %v608_v26 = vsel %vm376_vm3, %v606_v61, %v607_v62  ;;  %v609_v27 = vsel %vm376_vm3, %v607_v62, %v606_v61  ;;  %v629_v28 = vadd.f32 %v627_v18, %v625_v54  ;;  %v597_v31 = vadd.f32 %v2159_v39, %v585_v22  ;;  %v2466_v22 = vld [vmem:[%s2059_s5 + $0x78] sm:$0xff] }
  0x91   : > { %v612_v30 = vadd.f32 %v608_v26, %v604_v58  ;;  %v611_v32 = vmul.f32 %v2113_v15, %v609_v27  ;;  %v632_v33 = vadd.f32 %v630_v24, %v628_v23  ;;  %v636_v35 = vmul.f32 %v2347_v60, %v2093_v7 }
  0x92   : > { %v633_v34 = vadd.f32 %v631_v25, %v629_v28  ;;  %v640_v36 = vmul.f32 %v2407_v0, %v2099_v9  ;;  %v644_v37 = vmul.f32 %v2291_v56, %v2087_v5  ;;  %v605_v38 = vadd.f32 %v600_v51, %v597_v31 }
  0x93   : > { %1444 = vst [vmem:[%s2216_s6 + $0x40] sm:$0xff] %v612_v30  ;;  %v645_v40 = vmul.f32 %v2298_v63, %v2087_v5  ;;  %v646_v41 = vmul.f32 %v2347_v60, %v2102_v10  ;;  %v647_v42 = vmul.f32 %v2354_v11, %v2102_v10  ;;  %v638_v13 = vadd.f32 %v636_v35, %v634_v29 }
  0x94   : > { %v650_v59 = vmul.f32 %v2407_v0, %v2116_v16  ;;  %v651_v43 = vmul.f32 %v2410_v2, %v2116_v16  ;;  %v656_v56 = vrot.slane %v632_v33, 7  ;;  %v613_v44 = vadd.f32 %v611_v32, %v605_v38 }
  0x95   : > { %v648_v19 = vadd.f32 %v646_v41, %v644_v37  ;;  %v649_v57 = vadd.f32 %v647_v42, %v645_v40  ;;  %v657_v45 = vrot.slane %v633_v34, 7  ;;  %v642_v46 = vadd.f32 %v640_v36, %v638_v13 }
  0x96   : > { %v635_v47 = vmul.f32 %v2298_v63, %v2084_v4  ;;  %v637_v48 = vmul.f32 %v2354_v11, %v2093_v7  ;;  %v641_v49 = vmul.f32 %v2410_v2, %v2099_v9  ;;  %1445 = vst [vmem:[%s2216_s6 + $0x48] sm:$0xff] %v613_v44  ;;  %v682_v21 = vmul.f32 %v2347_v60, %v2081_v3 }
  0x97   : > { %v652_v50 = vadd.f32 %v650_v59, %v648_v19  ;;  %v653_v51 = vadd.f32 %v651_v43, %v649_v57  ;;  %v659_v52 = vsel %vm367_vm2, %v657_v45, %v656_v56  ;;  %v658_v14 = vsel %vm367_vm2, %v656_v56, %v657_v45 }
  0x98   : > { %v654_v53 = vadd.f32 %v2159_v39, %v642_v46  ;;  %v660_v63 = vmul.f32 %v2104_v12, %v659_v52  ;;  %v639_v17 = vadd.f32 %v637_v48, %v635_v47  ;;  %v683_v58 = vmul.f32 %v2354_v11, %v2081_v3 }
  0x99   : > { %v664_v20 = vrot.slane %v652_v50, 1  ;;  %v665_v54 = vrot.slane %v653_v51, 1  ;;  %v684_v61 = vmul.f32 %v2407_v0, %v2090_v6  ;;  %v685_v23 = vmul.f32 %v2410_v2, %v2090_v6 }
  0x9a   : > { %v662_v62 = vadd.f32 %v660_v63, %v654_v53  ;;  %v643_v18 = vadd.f32 %v641_v49, %v639_v17  ;;  %v688_v24 = vmul.f32 %v2459_v55, %v2096_v8  ;;  %v689_v28 = vmul.f32 %v2466_v22, %v2096_v8 }
  0x9b   : > { %v666_v25 = vsel %vm376_vm3, %v664_v20, %v665_v54  ;;  %v667_v26 = vsel %vm376_vm3, %v665_v54, %v664_v20  ;;  %v686_v27 = vadd.f32 %v684_v61, %v682_v21  ;;  %v687_v32 = vadd.f32 %v685_v23, %v683_v58 }
  0x9c   : > { %v670_v29 = vadd.f32 %v666_v25, %v662_v62  ;;  %v655_v30 = vadd.f32 %v2159_v39, %v643_v18  ;;  %v669_v31 = vmul.f32 %v2113_v15, %v667_v26  ;;  %v692_v34 = vmul.f32 %v2347_v60, %v2084_v4  ;;  %v2519_v62 = vld [vmem:[%s2059_s5 + $0x80] sm:$0xff]  ;;  %v2522_v18 = vld [vmem:[%s2059_s5 + $0x88] sm:$0xff] }
  0x9d   : > { %v690_v33 = vadd.f32 %v688_v24, %v686_v27  ;;  %v694_v35 = vmul.f32 %v2407_v0, %v2093_v7  ;;  %v698_v36 = vmul.f32 %v2459_v55, %v2099_v9  ;;  %v691_v38 = vadd.f32 %v689_v28, %v687_v32 }
  0x9e   : > { %1452 = vst [vmem:[%s2216_s6 + $0x50] sm:$0xff] %v670_v29  ;;  %v663_v37 = vadd.f32 %v658_v14, %v655_v30  ;;  %v702_v40 = vmul.f32 %v2347_v60, %v2087_v5  ;;  %v703_v41 = vmul.f32 %v2354_v11, %v2087_v5  ;;  %v704_v13 = vmul.f32 %v2407_v0, %v2102_v10 }
  0x9f   : > { %v696_v42 = vadd.f32 %v694_v35, %v692_v34  ;;  %v705_v59 = vmul.f32 %v2410_v2, %v2102_v10  ;;  %v708_v43 = vmul.f32 %v2459_v55, %v2116_v16  ;;  %v709_v44 = vmul.f32 %v2466_v22, %v2116_v16 }
  0xa0   : > { %v671_v56 = vadd.f32 %v669_v31, %v663_v37  ;;  %v714_v19 = vrot.slane %v690_v33, 7  ;;  %v715_v57 = vrot.slane %v691_v38, 7  ;;  %v706_v45 = vadd.f32 %v704_v13, %v702_v40 }
  0xa1   : > { %v700_v60 = vadd.f32 %v698_v36, %v696_v42  ;;  %v707_v46 = vadd.f32 %v705_v59, %v703_v41  ;;  %v693_v47 = vmul.f32 %v2354_v11, %v2084_v4  ;;  %v695_v49 = vmul.f32 %v2410_v2, %v2093_v7 }
  0xa2   : > { %1453 = vst [vmem:[%s2216_s6 + $0x58] sm:$0xff] %v671_v56  ;;  %v717_v48 = vsel %vm367_vm2, %v715_v57, %v714_v19  ;;  %v699_v50 = vmul.f32 %v2466_v22, %v2099_v9  ;;  %v716_v51 = vsel %vm367_vm2, %v714_v19, %v715_v57  ;;  %v710_v52 = vadd.f32 %v708_v43, %v706_v45 }
  0xa3   : > { %v711_v14 = vadd.f32 %v709_v44, %v707_v46  ;;  %v712_v53 = vadd.f32 %v2159_v39, %v700_v60  ;;  %v718_v11 = vmul.f32 %v2104_v12, %v717_v48  ;;  %v697_v63 = vadd.f32 %v695_v49, %v693_v47 }
  0xa4   : > { %v740_v17 = vmul.f32 %v2407_v0, %v2081_v3  ;;  %v741_v21 = vmul.f32 %v2410_v2, %v2081_v3  ;;  %v742_v20 = vmul.f32 %v2459_v55, %v2090_v6  ;;  %v722_v58 = vrot.slane %v710_v52, 1 }
  0xa5   : > { %v720_v54 = vadd.f32 %v718_v11, %v712_v53  ;;  %v723_v61 = vrot.slane %v711_v14, 1  ;;  %v743_v23 = vmul.f32 %v2466_v22, %v2090_v6  ;;  %v701_v24 = vadd.f32 %v699_v50, %v697_v63 }
  0xa6   : > { %v744_v25 = vadd.f32 %v742_v20, %v740_v17  ;;  %v746_v26 = vmul.f32 %v2519_v62, %v2096_v8  ;;  %v747_v27 = vmul.f32 %v2522_v18, %v2096_v8  ;;  %v750_v31 = vmul.f32 %v2407_v0, %v2084_v4  ;;  %v2571_v20 = vld [vmem:[%s2059_s5 + $0x90] sm:$0xff] }
  0xa7   : > { %v724_v28 = vsel %vm376_vm3, %v722_v58, %v723_v61  ;;  %v725_v29 = vsel %vm376_vm3, %v723_v61, %v722_v58  ;;  %v745_v30 = vadd.f32 %v743_v23, %v741_v21  ;;  %v713_v33 = vadd.f32 %v2159_v39, %v701_v24  ;;  %v2578_v24 = vld [vmem:[%s2059_s5 + $0x98] sm:$0xff] }
  0xa8   : > { %v728_v32 = vadd.f32 %v724_v28, %v720_v54  ;;  %v727_v34 = vmul.f32 %v2113_v15, %v725_v29  ;;  %v748_v35 = vadd.f32 %v746_v26, %v744_v25  ;;  %v752_v37 = vmul.f32 %v2459_v55, %v2093_v7 }
  0xa9   : > { %v749_v36 = vadd.f32 %v747_v27, %v745_v30  ;;  %v756_v38 = vmul.f32 %v2519_v62, %v2099_v9  ;;  %v760_v40 = vmul.f32 %v2407_v0, %v2087_v5  ;;  %v721_v41 = vadd.f32 %v716_v51, %v713_v33 }
  0xaa   : > { %1460 = vst [vmem:[%s2216_s6 + $0x60] sm:$0xff] %v728_v32  ;;  %v761_v42 = vmul.f32 %v2410_v2, %v2087_v5  ;;  %v762_v13 = vmul.f32 %v2459_v55, %v2102_v10  ;;  %v763_v59 = vmul.f32 %v2466_v22, %v2102_v10  ;;  %v754_v43 = vadd.f32 %v752_v37, %v750_v31 }
  0xab   : > { %v766_v56 = vmul.f32 %v2519_v62, %v2116_v16  ;;  %v767_v44 = vmul.f32 %v2522_v18, %v2116_v16  ;;  %v772_v0 = vrot.slane %v748_v35, 7  ;;  %v729_v19 = vadd.f32 %v727_v34, %v721_v41 }
  0xac   : > { %v764_v57 = vadd.f32 %v762_v13, %v760_v40  ;;  %v765_v60 = vadd.f32 %v763_v59, %v761_v42  ;;  %v773_v45 = vrot.slane %v749_v36, 7  ;;  %v758_v46 = vadd.f32 %v756_v38, %v754_v43 }
  0xad   : > { %v751_v47 = vmul.f32 %v2410_v2, %v2084_v4  ;;  %v753_v48 = vmul.f32 %v2466_v22, %v2093_v7  ;;  %v757_v49 = vmul.f32 %v2522_v18, %v2099_v9  ;;  %1461 = vst [vmem:[%s2216_s6 + $0x68] sm:$0xff] %v729_v19  ;;  %v798_v63 = vmul.f32 %v2459_v55, %v2081_v3 }
  0xae   : > { %v768_v50 = vadd.f32 %v766_v56, %v764_v57  ;;  %v769_v51 = vadd.f32 %v767_v44, %v765_v60  ;;  %v775_v52 = vsel %vm367_vm2, %v773_v45, %v772_v0  ;;  %v774_v14 = vsel %vm367_vm2, %v772_v0, %v773_v45 }
  0xaf   : > { %v770_v53 = vadd.f32 %v2159_v39, %v758_v46  ;;  %v776_v2 = vmul.f32 %v2104_v12, %v775_v52  ;;  %v755_v11 = vadd.f32 %v753_v48, %v751_v47  ;;  %v799_v54 = vmul.f32 %v2466_v22, %v2081_v3 }
  0xb0   : > { %v780_v17 = vrot.slane %v768_v50, 1  ;;  %v781_v21 = vrot.slane %v769_v51, 1  ;;  %v800_v58 = vmul.f32 %v2519_v62, %v2090_v6  ;;  %v801_v25 = vmul.f32 %v2522_v18, %v2090_v6 }
  0xb1   : > { %v778_v61 = vadd.f32 %v776_v2, %v770_v53  ;;  %v759_v23 = vadd.f32 %v757_v49, %v755_v11  ;;  %v804_v26 = vmul.f32 %v2571_v20, %v2096_v8  ;;  %v805_v30 = vmul.f32 %v2578_v24, %v2096_v8 }
  0xb2   : > { %v782_v27 = vsel %vm376_vm3, %v780_v17, %v781_v21  ;;  %v783_v28 = vsel %vm376_vm3, %v781_v21, %v780_v17  ;;  %v802_v29 = vadd.f32 %v800_v58, %v798_v63  ;;  %v803_v34 = vadd.f32 %v801_v25, %v799_v54 }
  0xb3   : > { %v786_v31 = vadd.f32 %v782_v27, %v778_v61  ;;  %v771_v32 = vadd.f32 %v2159_v39, %v759_v23  ;;  %v785_v33 = vmul.f32 %v2113_v15, %v783_v28  ;;  %v808_v36 = vmul.f32 %v2459_v55, %v2084_v4  ;;  %v2631_v61 = vld [vmem:[%s2059_s5 + $0xa0] sm:$0xff]  ;;  %v2634_v23 = vld [vmem:[%s2059_s5 + $0xa8] sm:$0xff] }
  0xb4   : > { %v806_v35 = vadd.f32 %v804_v26, %v802_v29  ;;  %v810_v37 = vmul.f32 %v2519_v62, %v2093_v7  ;;  %v814_v38 = vmul.f32 %v2571_v20, %v2099_v9  ;;  %v807_v41 = vadd.f32 %v805_v30, %v803_v34 }
  0xb5   : > { %1468 = vst [vmem:[%s2216_s6 + $0x70] sm:$0xff] %v786_v31  ;;  %v779_v40 = vadd.f32 %v774_v14, %v771_v32  ;;  %v818_v42 = vmul.f32 %v2459_v55, %v2087_v5  ;;  %v819_v13 = vmul.f32 %v2466_v22, %v2087_v5  ;;  %v820_v43 = vmul.f32 %v2519_v62, %v2102_v10 }
  0xb6   : > { %v812_v59 = vadd.f32 %v810_v37, %v808_v36  ;;  %v821_v56 = vmul.f32 %v2522_v18, %v2102_v10  ;;  %v824_v44 = vmul.f32 %v2571_v20, %v2116_v16  ;;  %v825_v19 = vmul.f32 %v2578_v24, %v2116_v16 }
  0xb7   : > { %v787_v0 = vadd.f32 %v785_v33, %v779_v40  ;;  %v830_v57 = vrot.slane %v806_v35, 7  ;;  %v831_v60 = vrot.slane %v807_v41, 7  ;;  %v822_v45 = vadd.f32 %v820_v43, %v818_v42 }
  0xb8   : > { %v816_v55 = vadd.f32 %v814_v38, %v812_v59  ;;  %v823_v46 = vadd.f32 %v821_v56, %v819_v13  ;;  %v809_v47 = vmul.f32 %v2466_v22, %v2084_v4  ;;  %v811_v49 = vmul.f32 %v2522_v18, %v2093_v7 }
  0xb9   : > { %1469 = vst [vmem:[%s2216_s6 + $0x78] sm:$0xff] %v787_v0  ;;  %v833_v48 = vsel %vm367_vm2, %v831_v60, %v830_v57  ;;  %v815_v50 = vmul.f32 %v2578_v24, %v2099_v9  ;;  %v832_v51 = vsel %vm367_vm2, %v830_v57, %v831_v60  ;;  %v826_v52 = vadd.f32 %v824_v44, %v822_v45 }
  0xba   : > { %v827_v14 = vadd.f32 %v825_v19, %v823_v46  ;;  %v828_v53 = vadd.f32 %v2159_v39, %v816_v55  ;;  %v834_v22 = vmul.f32 %v2104_v12, %v833_v48  ;;  %v813_v2 = vadd.f32 %v811_v49, %v809_v47 }
  0xbb   : > { %v856_v11 = vmul.f32 %v2519_v62, %v2081_v3  ;;  %v857_v63 = vmul.f32 %v2522_v18, %v2081_v3  ;;  %v858_v17 = vmul.f32 %v2571_v20, %v2090_v6  ;;  %v838_v54 = vrot.slane %v826_v52, 1  ;;  %v2683_v52 = vld [vmem:[%s2059_s5 + $0xb0] sm:$0xff] }
  0xbc   : > { %v836_v21 = vadd.f32 %v834_v22, %v828_v53  ;;  %v839_v58 = vrot.slane %v827_v14, 1  ;;  %v859_v25 = vmul.f32 %v2578_v24, %v2090_v6  ;;  %v817_v26 = vadd.f32 %v815_v50, %v813_v2 }
  0xbd   : > { %v860_v27 = vadd.f32 %v858_v17, %v856_v11  ;;  %v862_v28 = vmul.f32 %v2631_v61, %v2096_v8  ;;  %v863_v29 = vmul.f32 %v2634_v23, %v2096_v8  ;;  %v866_v33 = vmul.f32 %v2519_v62, %v2084_v4  ;;  %v2690_v11 = vld [vmem:[%s2059_s5 + $0xb8] sm:$0xff] }
  0xbe   : > { %v840_v30 = vsel %vm376_vm3, %v838_v54, %v839_v58  ;;  %v841_v31 = vsel %vm376_vm3, %v839_v58, %v838_v54  ;;  %v861_v32 = vadd.f32 %v859_v25, %v857_v63  ;;  %v829_v35 = vadd.f32 %v2159_v39, %v817_v26  ;;  %v2693_v63 = vld [vmem:[%s2066_s28 + $0x3] ss:$0 sm:$0xff] }
  0xbf   : > { %v844_v34 = vadd.f32 %v840_v30, %v836_v21  ;;  %v843_v36 = vmul.f32 %v2113_v15, %v841_v31  ;;  %v864_v37 = vadd.f32 %v862_v28, %v860_v27  ;;  %v868_v8 = vmul.f32 %v2571_v20, %v2093_v7  ;;  %v2698_v21 = vld [vmem:[%s2066_s28 + $0x6] ss:$0 sm:$0xff]  ;;  %v2711_v31 = vld [vmem:[%s2066_s28 + $0x1] ss:$0 sm:$0xff] }
  0xc0   : > { %v865_v38 = vadd.f32 %v863_v29, %v861_v32  ;;  %v872_v40 = vmul.f32 %v2631_v61, %v2099_v9  ;;  %v876_v41 = vmul.f32 %v2519_v62, %v2087_v5  ;;  %v837_v42 = vadd.f32 %v832_v51, %v829_v35  ;;  %v2721_v35 = vld [vmem:[%s2066_s28 + $0x7] ss:$0 sm:$0xff] }
  0xc1   : > { %1476 = vst [vmem:[%s2216_s6 + $0x80] sm:$0xff] %v844_v34  ;;  %v877_v13 = vmul.f32 %v2522_v18, %v2087_v5  ;;  %v878_v59 = vmul.f32 %v2571_v20, %v2102_v10  ;;  %v879_v43 = vmul.f32 %v2578_v24, %v2102_v10  ;;  %v870_v56 = vadd.f32 %v868_v8, %v866_v33  ;;  %v2716_v33 = vld [vmem:[%s2066_s28 + $0x4] ss:$0 sm:$0xff] }
  0xc2   : > { %v882_v44 = vmul.f32 %v2631_v61, %v2116_v16  ;;  %v883_v0 = vmul.f32 %v2634_v23, %v2116_v16  ;;  %v888_v62 = vrot.slane %v864_v37, 7  ;;  %v845_v19 = vadd.f32 %v843_v36, %v837_v42  ;;  %v2734_v42 = vld [vmem:[%s2066_s28 + $0x5] ss:$0 sm:$0xff] }
  0xc3   : > { %v880_v57 = vadd.f32 %v878_v59, %v876_v41  ;;  %v881_v60 = vadd.f32 %v879_v43, %v877_v13  ;;  %v889_v55 = vrot.slane %v865_v38, 7  ;;  %v874_v5 = vadd.f32 %v872_v40, %v870_v56  ;;  %v2727_v38 = vld [vmem:[%s2066_s28 + $0x2] ss:$0 sm:$0xff]  ;;  %v2741_v43 = vld [vmem:[%s2066_s28 + $0x8] ss:$0 sm:$0xff] }
  0xc4   : > { %v867_v45 = vmul.f32 %v2522_v18, %v2084_v4  ;;  %v869_v10 = vmul.f32 %v2578_v24, %v2093_v7  ;;  %v873_v46 = vmul.f32 %v2634_v23, %v2099_v9  ;;  %1477 = vst [vmem:[%s2216_s6 + $0x88] sm:$0xff] %v845_v19  ;;  %v914_v9 = vmul.f32 %v2571_v20, %v2081_v3 }
  0xc5   : > { %v884_v47 = vadd.f32 %v882_v44, %v880_v57  ;;  %v885_v16 = vadd.f32 %v883_v0, %v881_v60  ;;  %v891_v48 = vsel %vm367_vm2, %v889_v55, %v888_v62  ;;  %v890_v49 = vsel %vm367_vm2, %v888_v62, %v889_v55 }
  0xc6   : > { %v886_v4 = vadd.f32 %v2159_v39, %v874_v5  ;;  %v892_v18 = vmul.f32 %v2104_v12, %v891_v48  ;;  %v871_v7 = vadd.f32 %v869_v10, %v867_v45  ;;  %v915_v14 = vmul.f32 %v2578_v24, %v2081_v3  ;;  %v2759_v48 = vld [vmem:[%s2143_s30] ss:$0 sm:$0xff]  ;;  %s1723_s30 = scalar_lea.vmem %s1722_s12, 8192 }
  0xc7   : > { %v896_v50 = vrot.slane %v884_v47, 1  ;;  %v897_v51 = vrot.slane %v885_v16, 1  ;;  %v916_v53 = vmul.f32 %v2631_v61, %v2090_v6  ;;  %v917_v17 = vmul.f32 %v2693_v63, %v2634_v23  ;;  %p1725_p6 = scmp.lt.s32.totalorder %s1723_s30, %s1717_s4 }
  0xc8   : > { %v894_v22 = vadd.f32 %v892_v18, %v886_v4  ;;  %v875_v2 = vadd.f32 %v873_v46, %v871_v7  ;;  %v920_v3 = vmul.f32 %v2698_v21, %v2683_v52  ;;  %v921_v25 = vmul.f32 %v2698_v21, %v2690_v11  ;;  %v2764_v18 = vld [vmem:[%s2066_s28] ss:$0 sm:$0xff]  ;;  %s1255_s28 = scalar_lea.sflag [#allocation4], %s2053_s27 }
  0xc9   : > { %v898_v6 = vsel %vm376_vm3, %v896_v50, %v897_v51  ;;  %v899_v54 = vsel %vm376_vm3, %v897_v51, %v896_v50  ;;  %v918_v58 = vadd.f32 %v916_v53, %v914_v9  ;;  %v919_v29 = vadd.f32 %v917_v17, %v915_v14  ;;  %p1726_p4 = por %p1725_p6, %p1724_p1 }
  0xca   : > { %v902_v26 = vadd.f32 %v898_v6, %v894_v22  ;;  %v887_v27 = vadd.f32 %v2159_v39, %v875_v2  ;;  %v901_v28 = vmul.f32 %v2113_v15, %v899_v54  ;;  %v924_v32 = vmul.f32 %v2711_v31, %v2571_v20  ;;  %v2773_v22 = vld [vmem:[%s2059_s5 + $0xc0] sm:$0xff]  ;;  %v2776_v2 = vld [vmem:[%s2059_s5 + $0xc8] sm:$0xff] }
  0xcb   : > { %v922_v30 = vadd.f32 %v920_v3, %v918_v58  ;;  %v926_v34 = vmul.f32 %v2716_v33, %v2631_v61  ;;  %v930_v39 = vmul.f32 %v2721_v35, %v2683_v52  ;;  %v923_v37 = vadd.f32 %v921_v25, %v919_v29  ;;  %p1727_p2 = pnand %p1726_p4, %p1720_p3 }
  0xcc   : > { %1484 = vst [vmem:[%s2216_s6 + $0x90] sm:$0xff] %v902_v26  ;;  %v895_v36 = vadd.f32 %v890_v49, %v887_v27  ;;  %v934_v8 = vmul.f32 %v2727_v38, %v2571_v20  ;;  %v935_v40 = vmul.f32 %v2727_v38, %v2578_v24  ;;  %v936_v13 = vmul.f32 %v2734_v42, %v2631_v61 }
  0xcd   : > { %v928_v41 = vadd.f32 %v926_v34, %v924_v32  ;;  %v937_v59 = vmul.f32 %v2734_v42, %v2634_v23  ;;  %v940_v56 = vmul.f32 %v2741_v43, %v2683_v52  ;;  %v941_v44 = vmul.f32 %v2741_v43, %v2690_v11 }
  0xce   : > { %v903_v20 = vadd.f32 %v901_v28, %v895_v36  ;;  %v946_v0 = vrot.slane %v922_v30, 7  ;;  %v947_v62 = vrot.slane %v923_v37, 7  ;;  %v938_v57 = vadd.f32 %v936_v13, %v934_v8 }
  0xcf   : > { %v932_v19 = vadd.f32 %v930_v39, %v928_v41  ;;  %v939_v60 = vadd.f32 %v937_v59, %v935_v40  ;;  %v925_v55 = vmul.f32 %v2711_v31, %v2578_v24  ;;  %v927_v45 = vmul.f32 %v2716_v33, %v2634_v23 }
  0xd0   : > { %1485 = vst [vmem:[%s2216_s6 + $0x98] sm:$0xff] %v903_v20  ;;  %v949_v5 = vsel %vm367_vm2, %v947_v62, %v946_v0  ;;  %v931_v10 = vmul.f32 %v2721_v35, %v2690_v11  ;;  %v948_v46 = vsel %vm367_vm2, %v946_v0, %v947_v62  ;;  %v942_v47 = vadd.f32 %v940_v56, %v938_v57 }
  0xd1   : > { %v943_v16 = vadd.f32 %v941_v44, %v939_v60  ;;  %v944_v24 = vadd.f32 %v2759_v48, %v932_v19  ;;  %v950_v49 = vmul.f32 %v2104_v12, %v949_v5  ;;  %v929_v4 = vadd.f32 %v927_v45, %v925_v55 }
  0xd2   : > { %v972_v7 = vmul.f32 %v2764_v18, %v2631_v61  ;;  %v973_v9 = vmul.f32 %v2764_v18, %v2634_v23  ;;  %v974_v50 = vmul.f32 %v2693_v63, %v2683_v52  ;;  %v954_v14 = vrot.slane %v942_v47, 1 }
  0xd3   : > { %v952_v51 = vadd.f32 %v950_v49, %v944_v24  ;;  %v955_v53 = vrot.slane %v943_v16, 1  ;;  %v975_v17 = vmul.f32 %v2693_v63, %v2690_v11  ;;  %v933_v3 = vadd.f32 %v931_v10, %v929_v4 }
  0xd4   : > { %v976_v6 = vadd.f32 %v974_v50, %v972_v7  ;;  %v978_v54 = vmul.f32 %v2698_v21, %v2773_v22  ;;  %v979_v58 = vmul.f32 %v2698_v21, %v2776_v2  ;;  %v982_v28 = vmul.f32 %v2711_v31, %v2631_v61  ;;  %v2825_v50 = vld [vmem:[%s2059_s5 + $0xd0] sm:$0xff] }
  0xd5   : > { %v956_v25 = vsel %vm376_vm3, %v954_v14, %v955_v53  ;;  %v957_v26 = vsel %vm376_vm3, %v955_v53, %v954_v14  ;;  %v977_v27 = vadd.f32 %v975_v17, %v973_v9  ;;  %v945_v30 = vadd.f32 %v2759_v48, %v933_v3  ;;  %v2832_v3 = vld [vmem:[%s2059_s5 + $0xd8] sm:$0xff] }
  0xd6   : > { %v960_v29 = vadd.f32 %v956_v25, %v952_v51  ;;  %v959_v32 = vmul.f32 %v2113_v15, %v957_v26  ;;  %v980_v34 = vadd.f32 %v978_v54, %v976_v6  ;;  %v984_v36 = vmul.f32 %v2716_v33, %v2683_v52 }
  0xd7   : > { %v981_v39 = vadd.f32 %v979_v58, %v977_v27  ;;  %v988_v37 = vmul.f32 %v2721_v35, %v2773_v22  ;;  %v992_v8 = vmul.f32 %v2727_v38, %v2631_v61  ;;  %v953_v40 = vadd.f32 %v948_v46, %v945_v30 }
  0xd8   : > { %1492 = vst [vmem:[%s2216_s6 + $0xa0] sm:$0xff] %v960_v29  ;;  %v993_v41 = vmul.f32 %v2727_v38, %v2634_v23  ;;  %v994_v13 = vmul.f32 %v2734_v42, %v2683_v52  ;;  %v995_v59 = vmul.f32 %v2734_v42, %v2690_v11  ;;  %v986_v56 = vadd.f32 %v984_v36, %v982_v28 }
  0xd9   : > { %v998_v20 = vmul.f32 %v2741_v43, %v2773_v22  ;;  %v999_v44 = vmul.f32 %v2741_v43, %v2776_v2  ;;  %v1004_v61 = vrot.slane %v980_v34, 7  ;;  %v961_v0 = vadd.f32 %v959_v32, %v953_v40 }
  0xda   : > { %v996_v62 = vadd.f32 %v994_v13, %v992_v8  ;;  %v997_v19 = vadd.f32 %v995_v59, %v993_v41  ;;  %v1005_v57 = vrot.slane %v981_v39, 7  ;;  %v990_v60 = vadd.f32 %v988_v37, %v986_v56 }
  0xdb   : > { %v983_v55 = vmul.f32 %v2711_v31, %v2634_v23  ;;  %v985_v5 = vmul.f32 %v2716_v33, %v2690_v11  ;;  %v989_v45 = vmul.f32 %v2721_v35, %v2776_v2  ;;  %1493 = vst [vmem:[%s2216_s6 + $0xa8] sm:$0xff] %v961_v0  ;;  %v1030_v4 = vmul.f32 %v2764_v18, %v2683_v52 }
  0xdc   : > { %v1000_v10 = vadd.f32 %v998_v20, %v996_v62  ;;  %v1001_v46 = vadd.f32 %v999_v44, %v997_v19  ;;  %v1007_v47 = vsel %vm367_vm2, %v1005_v57, %v1004_v61  ;;  %v1006_v16 = vsel %vm367_vm2, %v1004_v61, %v1005_v57 }
  0xdd   : > { %v1002_v24 = vadd.f32 %v2759_v48, %v990_v60  ;;  %v1008_v23 = vmul.f32 %v2104_v12, %v1007_v47  ;;  %v987_v49 = vadd.f32 %v985_v5, %v983_v55  ;;  %v1031_v51 = vmul.f32 %v2764_v18, %v2690_v11 }
  0xde   : > { %v1012_v7 = vrot.slane %v1000_v10, 1  ;;  %v1013_v9 = vrot.slane %v1001_v46, 1  ;;  %v1032_v14 = vmul.f32 %v2693_v63, %v2773_v22  ;;  %v1033_v6 = vmul.f32 %v2693_v63, %v2776_v2 }
  0xdf   : > { %v1010_v53 = vadd.f32 %v1008_v23, %v1002_v24  ;;  %v991_v17 = vadd.f32 %v989_v45, %v987_v49  ;;  %v1036_v54 = vmul.f32 %v2698_v21, %v2825_v50  ;;  %v1037_v27 = vmul.f32 %v2698_v21, %v2832_v3 }
  0xe0   : > { %v1014_v58 = vsel %vm376_vm3, %v1012_v7, %v1013_v9  ;;  %v1015_v25 = vsel %vm376_vm3, %v1013_v9, %v1012_v7  ;;  %v1034_v26 = vadd.f32 %v1032_v14, %v1030_v4  ;;  %v1035_v32 = vadd.f32 %v1033_v6, %v1031_v51 }
  0xe1   : > { %v1018_v28 = vadd.f32 %v1014_v58, %v1010_v53  ;;  %v1003_v29 = vadd.f32 %v2759_v48, %v991_v17  ;;  %v1017_v30 = vmul.f32 %v2113_v15, %v1015_v25  ;;  %v1040_v39 = vmul.f32 %v2711_v31, %v2683_v52  ;;  %v2885_v53 = vld [vmem:[%s2059_s5 + $0xe0] sm:$0xff]  ;;  %v2888_v17 = vld [vmem:[%s2059_s5 + $0xe8] sm:$0xff] }
  0xe2   : > { %v1038_v34 = vadd.f32 %v1036_v54, %v1034_v26  ;;  %v1042_v36 = vmul.f32 %v2716_v33, %v2773_v22  ;;  %v1046_v37 = vmul.f32 %v2721_v35, %v2825_v50  ;;  %v1039_v40 = vadd.f32 %v1037_v27, %v1035_v32 }
  0xe3   : > { %1500 = vst [vmem:[%s2216_s6 + $0xb0] sm:$0xff] %v1018_v28  ;;  %v1011_v8 = vadd.f32 %v1006_v16, %v1003_v29  ;;  %v1050_v41 = vmul.f32 %v2727_v38, %v2683_v52  ;;  %v1051_v13 = vmul.f32 %v2727_v38, %v2690_v11  ;;  %v1052_v56 = vmul.f32 %v2734_v42, %v2773_v22 }
  0xe4   : > { %v1044_v59 = vadd.f32 %v1042_v36, %v1040_v39  ;;  %v1053_v20 = vmul.f32 %v2734_v42, %v2776_v2  ;;  %v1056_v44 = vmul.f32 %v2741_v43, %v2825_v50  ;;  %v1057_v0 = vmul.f32 %v2741_v43, %v2832_v3 }
  0xe5   : > { %v1019_v61 = vadd.f32 %v1017_v30, %v1011_v8  ;;  %v1062_v62 = vrot.slane %v1038_v34, 7  ;;  %v1063_v19 = vrot.slane %v1039_v40, 7  ;;  %v1054_v57 = vadd.f32 %v1052_v56, %v1050_v41 }
  0xe6   : > { %v1048_v52 = vadd.f32 %v1046_v37, %v1044_v59  ;;  %v1055_v60 = vadd.f32 %v1053_v20, %v1051_v13  ;;  %v1041_v55 = vmul.f32 %v2711_v31, %v2690_v11  ;;  %v1043_v45 = vmul.f32 %v2716_v33, %v2776_v2 }
  0xe7   : > { %1501 = vst [vmem:[%s2216_s6 + $0xb8] sm:$0xff] %v1019_v61  ;;  %v1065_v5 = vsel %vm367_vm2, %v1063_v19, %v1062_v62  ;;  %v1047_v10 = vmul.f32 %v2721_v35, %v2832_v3  ;;  %v1064_v46 = vsel %vm367_vm2, %v1062_v62, %v1063_v19  ;;  %v1058_v47 = vadd.f32 %v1056_v44, %v1054_v57 }
  0xe8   : > { %v1059_v16 = vadd.f32 %v1057_v0, %v1055_v60  ;;  %v1060_v24 = vadd.f32 %v2759_v48, %v1048_v52  ;;  %v1066_v11 = vmul.f32 %v2104_v12, %v1065_v5  ;;  %v1045_v23 = vadd.f32 %v1043_v45, %v1041_v55 }
  0xe9   : > { %v1088_v49 = vmul.f32 %v2764_v18, %v2773_v22  ;;  %v1089_v4 = vmul.f32 %v2764_v18, %v2776_v2  ;;  %v1090_v7 = vmul.f32 %v2693_v63, %v2825_v50  ;;  %v1070_v51 = vrot.slane %v1058_v47, 1 }
  0xea   : > { %v1068_v9 = vadd.f32 %v1066_v11, %v1060_v24  ;;  %v1071_v14 = vrot.slane %v1059_v16, 1  ;;  %v1091_v6 = vmul.f32 %v2693_v63, %v2832_v3  ;;  %v1049_v54 = vadd.f32 %v1047_v10, %v1045_v23 }
  0xeb   : > { %v1092_v58 = vadd.f32 %v1090_v7, %v1088_v49  ;;  %v1094_v25 = vmul.f32 %v2698_v21, %v2885_v53  ;;  %v1095_v26 = vmul.f32 %v2698_v21, %v2888_v17  ;;  %v1098_v30 = vmul.f32 %v2711_v31, %v2773_v22  ;;  %v2937_v7 = vld [vmem:[%s2059_s5 + $0xf0] sm:$0xff] }
  0xec   : > { %v1072_v27 = vsel %vm376_vm3, %v1070_v51, %v1071_v14  ;;  %v1073_v28 = vsel %vm376_vm3, %v1071_v14, %v1070_v51  ;;  %v1093_v29 = vadd.f32 %v1091_v6, %v1089_v4  ;;  %v1061_v34 = vadd.f32 %v2759_v48, %v1049_v54  ;;  %v2944_v54 = vld [vmem:[%s2059_s5 + $0xf8] sm:$0xff] }
  0xed   : > { %v1076_v32 = vadd.f32 %v1072_v27, %v1068_v9  ;;  %v1075_v39 = vmul.f32 %v2113_v15, %v1073_v28  ;;  %v1096_v36 = vadd.f32 %v1094_v25, %v1092_v58  ;;  %v1100_v8 = vmul.f32 %v2716_v33, %v2825_v50 }
  0xee   : > { %v1097_v37 = vadd.f32 %v1095_v26, %v1093_v29  ;;  %v1104_v40 = vmul.f32 %v2721_v35, %v2885_v53  ;;  %v1108_v41 = vmul.f32 %v2727_v38, %v2773_v22  ;;  %v1069_v13 = vadd.f32 %v1064_v46, %v1061_v34 }
  0xef   : > { %1508 = vst [vmem:[%s2216_s6 + $0xc0] sm:$0xff] %v1076_v32  ;;  %v1109_v59 = vmul.f32 %v2727_v38, %v2776_v2  ;;  %v1110_v56 = vmul.f32 %v2734_v42, %v2825_v50  ;;  %v1111_v20 = vmul.f32 %v2734_v42, %v2832_v3  ;;  %v1102_v44 = vadd.f32 %v1100_v8, %v1098_v30 }
  0xf0   : > { %v1114_v61 = vmul.f32 %v2741_v43, %v2885_v53  ;;  %v1115_v0 = vmul.f32 %v2741_v43, %v2888_v17  ;;  %v1120_v22 = vrot.slane %v1096_v36, 7  ;;  %v1077_v62 = vadd.f32 %v1075_v39, %v1069_v13 }
  0xf1   : > { %v1112_v19 = vadd.f32 %v1110_v56, %v1108_v41  ;;  %v1113_v52 = vadd.f32 %v1111_v20, %v1109_v59  ;;  %v1121_v57 = vrot.slane %v1097_v37, 7  ;;  %v1106_v60 = vadd.f32 %v1104_v40, %v1102_v44 }
  0xf2   : > { %v1099_v55 = vmul.f32 %v2711_v31, %v2776_v2  ;;  %v1101_v5 = vmul.f32 %v2716_v33, %v2832_v3  ;;  %v1105_v45 = vmul.f32 %v2721_v35, %v2888_v17  ;;  %1509 = vst [vmem:[%s2216_s6 + $0xc8] sm:$0xff] %v1077_v62  ;;  %v1146_v23 = vmul.f32 %v2764_v18, %v2825_v50 }
  0xf3   : > { %v1116_v10 = vadd.f32 %v1114_v61, %v1112_v19  ;;  %v1117_v46 = vadd.f32 %v1115_v0, %v1113_v52  ;;  %v1123_v47 = vsel %vm367_vm2, %v1121_v57, %v1120_v22  ;;  %v1122_v16 = vsel %vm367_vm2, %v1120_v22, %v1121_v57 }
  0xf4   : > { %v1118_v24 = vadd.f32 %v2759_v48, %v1106_v60  ;;  %v1124_v2 = vmul.f32 %v2104_v12, %v1123_v47  ;;  %v1103_v11 = vadd.f32 %v1101_v5, %v1099_v55  ;;  %v1147_v9 = vmul.f32 %v2764_v18, %v2832_v3 }
  0xf5   : > { %v1128_v49 = vrot.slane %v1116_v10, 1  ;;  %v1129_v4 = vrot.slane %v1117_v46, 1  ;;  %v1148_v51 = vmul.f32 %v2693_v63, %v2885_v53  ;;  %v1149_v58 = vmul.f32 %v2693_v63, %v2888_v17 }
  0xf6   : > { %v1126_v14 = vadd.f32 %v1124_v2, %v1118_v24  ;;  %v1107_v6 = vadd.f32 %v1105_v45, %v1103_v11  ;;  %v1152_v25 = vmul.f32 %v2698_v21, %v2937_v7  ;;  %v1153_v29 = vmul.f32 %v2698_v21, %v2944_v54 }
  0xf7   : > { %v1130_v26 = vsel %vm376_vm3, %v1128_v49, %v1129_v4  ;;  %v1131_v27 = vsel %vm376_vm3, %v1129_v4, %v1128_v49  ;;  %v1150_v28 = vadd.f32 %v1148_v51, %v1146_v23  ;;  %v1151_v39 = vadd.f32 %v1149_v58, %v1147_v9 }
  0xf8   : > { %v1134_v30 = vadd.f32 %v1130_v26, %v1126_v14  ;;  %v1119_v32 = vadd.f32 %v2759_v48, %v1107_v6  ;;  %v1133_v34 = vmul.f32 %v2113_v15, %v1131_v27  ;;  %v1156_v37 = vmul.f32 %v2711_v31, %v2825_v50 }
  0xf9   : > { %v1154_v36 = vadd.f32 %v1152_v25, %v1150_v28  ;;  %v1158_v8 = vmul.f32 %v2716_v33, %v2885_v53  ;;  %v1162_v40 = vmul.f32 %v2721_v35, %v2937_v7  ;;  %v1155_v13 = vadd.f32 %v1153_v29, %v1151_v39 }
  0xfa   : > { %1516 = vst [vmem:[%s2216_s6 + $0xd0] sm:$0xff] %v1134_v30  ;;  %v1127_v41 = vadd.f32 %v1122_v16, %v1119_v32  ;;  %v1166_v59 = vmul.f32 %v2727_v38, %v2825_v50  ;;  %v1167_v56 = vmul.f32 %v2727_v38, %v2832_v3  ;;  %v1168_v44 = vmul.f32 %v2734_v42, %v2885_v53 }
  0xfb   : > { %v1160_v20 = vadd.f32 %v1158_v8, %v1156_v37  ;;  %v1169_v61 = vmul.f32 %v2734_v42, %v2888_v17  ;;  %v1172_v0 = vmul.f32 %v2741_v43, %v2937_v7  ;;  %v1173_v62 = vmul.f32 %v2741_v43, %v2944_v54 }
  0xfc   : > { %v1135_v22 = vadd.f32 %v1133_v34, %v1127_v41  ;;  %v1178_v19 = vrot.slane %v1154_v36, 7  ;;  %v1179_v52 = vrot.slane %v1155_v13, 7  ;;  %v1170_v57 = vadd.f32 %v1168_v44, %v1166_v59 }
  0xfd   : > { %v1164_v50 = vadd.f32 %v1162_v40, %v1160_v20  ;;  %v1171_v60 = vadd.f32 %v1169_v61, %v1167_v56  ;;  %v1157_v55 = vmul.f32 %v2711_v31, %v2832_v3  ;;  %v1159_v45 = vmul.f32 %v2716_v33, %v2888_v17 }
  0xfe   : > { %1517 = vst [vmem:[%s2216_s6 + $0xd8] sm:$0xff] %v1135_v22  ;;  %v1181_v5 = vsel %vm367_vm2, %v1179_v52, %v1178_v19  ;;  %v1163_v10 = vmul.f32 %v2721_v35, %v2944_v54  ;;  %v1180_v46 = vsel %vm367_vm2, %v1178_v19, %v1179_v52  ;;  %v1174_v47 = vadd.f32 %v1172_v0, %v1170_v57 }
  0xff   : > { %v1175_v16 = vadd.f32 %v1173_v62, %v1171_v60  ;;  %v1176_v24 = vadd.f32 %v2759_v48, %v1164_v50  ;;  %v1182_v2 = vmul.f32 %v2104_v12, %v1181_v5  ;;  %v1161_v3 = vadd.f32 %v1159_v45, %v1157_v55 }
 0x100   : > { %v1201_v11 = vmul.f32 0.0, %v2937_v7  ;;  %v1202_v23 = vmul.f32 0.0, %v2944_v54  ;;  %v1203_v49 = vmul.f32 %v2764_v18, %v2885_v53  ;;  %v1186_v9 = vrot.slane %v1174_v47, 1 }
 0x101   : > { %v1184_v4 = vadd.f32 %v1182_v2, %v1176_v24  ;;  %v1187_v51 = vrot.slane %v1175_v16, 1  ;;  %v1204_v14 = vmul.f32 %v2764_v18, %v2888_v17  ;;  %v1165_v6 = vadd.f32 %v1163_v10, %v1161_v3 }
 0x102   : > { %v1205_v58 = vmul.f32 %v2693_v63, %v2937_v7  ;;  %v1206_v25 = vmul.f32 %v2693_v63, %v2944_v54  ;;  %v1209_v26 = vmul.f32 %v2698_v21, %v1201_v11  ;;  %v1210_v29 = vmul.f32 %v2698_v21, %v1202_v23 }
 0x103   : > { %v1188_v27 = vsel %vm376_vm3, %v1186_v9, %v1187_v51  ;;  %v1189_v28 = vsel %vm376_vm3, %v1187_v51, %v1186_v9  ;;  %v1213_v18 = vmul.f32 %v2711_v31, %v2885_v53  ;;  %v1177_v32 = vadd.f32 %v2759_v48, %v1165_v6 }
 0x104   : > { %v1192_v30 = vadd.f32 %v1188_v27, %v1184_v4  ;;  %v1191_v34 = vmul.f32 %v2113_v15, %v1189_v28  ;;  %v1207_v39 = vadd.f32 %v1205_v58, %v1203_v49  ;;  %v1208_v63 = vadd.f32 %v1206_v25, %v1204_v14 }
 0x105   : > { %v1215_v36 = vmul.f32 %v2716_v33, %v2937_v7  ;;  %v1219_v37 = vmul.f32 %v2721_v35, %v1201_v11  ;;  %v1223_v8 = vmul.f32 %v2727_v38, %v2885_v53  ;;  %v1185_v21 = vadd.f32 %v1180_v46, %v1177_v32 }
 0x106   : > { %1524 = vst [vmem:[%s2216_s6 + $0xe0] sm:$0xff] %v1192_v30  ;;  %v1211_v40 = vadd.f32 %v1209_v26, %v1207_v39  ;;  %v1224_v41 = vmul.f32 %v2727_v38, %v2888_v17  ;;  %v1225_v13 = vmul.f32 %v2734_v42, %v2937_v7  ;;  %v1212_v59 = vadd.f32 %v1210_v29, %v1208_v63 }
 0x107   : > { %v1217_v56 = vadd.f32 %v1215_v36, %v1213_v18  ;;  %v1226_v20 = vmul.f32 %v2734_v42, %v2944_v54  ;;  %v1229_v44 = vmul.f32 %v2741_v43, %v1201_v11  ;;  %v1193_v61 = vadd.f32 %v1191_v34, %v1185_v21 }
 0x108   : > { %v1227_v53 = vadd.f32 %v1225_v13, %v1223_v8  ;;  %v1230_v0 = vmul.f32 %v2741_v43, %v1202_v23  ;;  %v1235_v22 = vrot.slane %v1211_v40, 7  ;;  %v1236_v52 = vrot.slane %v1212_v59, 7 }
 0x109   : > { %v1221_v62 = vadd.f32 %v1219_v37, %v1217_v56  ;;  %v1228_v19 = vadd.f32 %v1226_v20, %v1224_v41  ;;  %v1214_v38 = vmul.f32 %v2711_v31, %v2888_v17  ;;  %1525 = vst [vmem:[%s2216_s6 + $0xe8] sm:$0xff] %v1193_v61  ;;  %v1216_v42 = vmul.f32 %v2716_v33, %v2944_v54 }
 0x10a   : > { %v1231_v7 = vadd.f32 %v1229_v44, %v1227_v53  ;;  %v1220_v50 = vmul.f32 %v2721_v35, %v1202_v23  ;;  %v1238_v43 = vsel %vm367_vm2, %v1236_v52, %v1235_v22  ;;  %v1237_v54 = vsel %vm367_vm2, %v1235_v22, %v1236_v52 }
 0x10b   : > { %v1232_v57 = vadd.f32 %v1230_v0, %v1228_v19  ;;  %v1233_v60 = vadd.f32 %v2759_v48, %v1221_v62  ;;  %v1239_v55 = vmul.f32 %v2104_v12, %v1238_v43  ;;  %v1218_v31 = vadd.f32 %v1216_v42, %v1214_v38 }
 0x10c   : > { %v1243_v5 = vrot.slane %v1231_v7, 1 }
 0x10d   : > { %v1244_v17 = vrot.slane %v1232_v57, 1  ;;  %v1241_v45 = vadd.f32 %v1239_v55, %v1233_v60  ;;  %v1222_v33 = vadd.f32 %v1220_v50, %v1218_v31 }
 0x10f   : > { %v1245_v35 = vsel %vm376_vm3, %v1243_v5, %v1244_v17  ;;  %v1246_v10 = vsel %vm376_vm3, %v1244_v17, %v1243_v5  ;;  %v1234_v46 = vadd.f32 %v2759_v48, %v1222_v33 }
 0x110   : > { %v1249_v12 = vadd.f32 %v1245_v35, %v1241_v45  ;;  %v1248_v47 = vmul.f32 %v2113_v15, %v1246_v10 }
 0x111   : > { %v1242_v16 = vadd.f32 %v1237_v54, %v1234_v46 }
 0x112   : > { %1530 = vst [vmem:[%s2216_s6 + $0xf0] sm:$0xff] %v1249_v12 }
 0x113   : > { %v1250_v1 = vadd.f32 %v1248_v47, %v1242_v16 }
 0x115   : > { %1531 = vst [vmem:[%s2216_s6 + $0xf8] sm:$0xff] %v1250_v1 }
 0x116   : > { %1730 = shalt.err (!%p1727_p2)
}
 0x117   : > { %s1731_s6 = scalar_lea.hbm %s3049_s3, 4096  ;;  %s1735_s23 = scalar_lea.hbm %s3147_s10, 16384 }
 0x118   : > { %p1732_p13 = scmp.ne.s32.totalorder %s3049_s3, %s1731_s6  ;;  %p1736_p9 = scmp.lt.s32.totalorder %s3049_s3, %s3147_s10 }
 0x119   : > { %p1737_p10 = scmp.lt.s32.totalorder %s1735_s23, %s1731_s6 }
 0x11a   : > { %p1733_p5 = pnand %p1732_p13, %p1973_p11 }
 0x11b   : > { %p1738_p8 = por %p1737_p10, %p1736_p9 }
 0x11c   : > { %p1734_p0 = pneg %p1733_p5 }
 0x11e   : > { %p1739_p7 = pnand %p1738_p8, %p1734_p0 }
 0x120   : > { %1742 = shalt.err (!%p1739_p7)
}
 0x121   : > { %s1850_s5 = smov 128   ;;  %s1851_s15 = smov 256  }
 0x122   : > { %s1852_s4 = smov 8  }
 0x123   : > { %1541 = dma.vmem_to_hbm [thread:$0]  (%p1973_p11), %s3051_s18, 4096, %s3049_s3, %s1255_s28, %s1850_s5, %s1851_s15, %s1852_s4  }
 0x124 PF: > { %s3148_s24 = sld [smem:[#allocation11_spill]]  ;;  %p1555_p12 = scmp.ge.s32.totalorder %s1841_s22, 2 }
 0x125   : > { %p3149_p3 = scmp.ne.s32.totalorder %s3135_s8, 0 }
 0x127   : > { %p1551_p1 = pnand %p1555_p12, %p3149_p3 }
 0x129   : > { %p1552_p6 = pneg %p1551_p1 }
 0x12a   : > { %s1284_s12 = sand.u32 1, %s3148_s24  }
 0x12b   : > { %s1285_s30 = scalar_lea.sflag [#allocation4], %s1284_s12 }
 0x12c   : > { %1796 = dma.done.wait (%p1552_p6), %s1285_s30, 4096  }
 0x12d   : > { %1798 = vsyncadd (%p1552_p6), %s1285_s30, 4294963200  ;;  %s22_s22 = sadd.s32 1, %s1841_s22   ;;  %s3150_s7 = sld [smem:[#allocation13_spill]] }
 0x12e   : > { %p19_p4 = scmp.ge.s32.totalorder %s22_s22, 6   ;;  %s3151_s27 = sld [smem:[#allocation14_spill]] }
 0x12f   : > { %s3152_s12 = smov %s1805_s13  ;;  %s3153_s13 = smov %s1809_s14 }
 0x130   : > { %s3154_s14 = smov %s2020_s11  ;;  %s3155_s15 = smov %s1817_s16 }
 0x131   : > { %s3156_s16 = smov %s1821_s17  ;;  %s3157_s17 = smov %s1983_s9 }
 0x132   : > { %s3158_s18 = smov %s1833_s20  ;;  %s3159_s19 = smov %s1837_s21 }
 0x133   : > { %s3160_s20 = smov %s3150_s7  ;;  %21 = sbr.rel (!%p19_p4) target bundleno = 13 (0xd), region = 123 }
 0x134   : > { %s3161_s21 = smov %s3151_s27 }
 0x138   :  { %1290 = vsyncpa [#allocation3], 1 }
 0x139   :  { %1292 = vsyncpa [#allocation3 + $0x1], 1 }
 0x13a   :  { %1293 = vsyncpa [#allocation6], 1 }
 0x13b   :  { %1295 = vsyncpa [#allocation6 + $0x1], 1 }
 0x13c   :  { %1296 = vsyncpa [#allocation4], 1 }
 0x13d   :  { %1298 = vsyncpa [#allocation4 + $0x1], 1 }

</bundles_post_ra>
